<compile_context>
chip_gen: v7x
topology: tpu7x:2x2x1
jax: 0.10.0
libtpu: 0.0.40
codegen_flags: <defaults>
</compile_context>

<pallas_src>
import jax
import jax.numpy as jnp
from jax.experimental import pallas as pl
from jax.experimental.pallas import tpu as pltpu


def decoder_step_kernel(
    feat_ref, emb_ref, len_ref, mfeat_ref,
    w_ih_ref, b_ih_ref, w_ic_ref, b_ic_ref,
    w_enc_ref, b_enc_ref, w_dec_ref, b_dec_ref, w_com_ref,
    w_lih_e_ref, w_lih_f_ref, w_lhh_ref, b_lstm_ref,
    w_top_ref, b_top_ref,
    pred_ref, alpha_ref,
    h_sc, c_sc, enc_sc,
):
    t = pl.program_id(0)
    B, L, F = feat_ref.shape
    A = w_enc_ref.shape[1]
    H = w_dec_ref.shape[0]
    V = w_top_ref.shape[1]
    E = emb_ref.shape[2]

    # ---- one-time work: LSTM init + encoder projection (features are constant) ----
    @pl.when(t == 0)
    def _init():
        mf = mfeat_ref[...]                                   # (B, F), unsorted means
        h_sc[...] = (jnp.dot(mf, w_ih_ref[...], preferred_element_type=jnp.float32)
                     + b_ih_ref[...])
        c_sc[...] = (jnp.dot(mf, w_ic_ref[...], preferred_element_type=jnp.float32)
                     + b_ic_ref[...])
        enc = jnp.dot(feat_ref[...].reshape(B * L, F), w_enc_ref[...],
                      preferred_element_type=jnp.float32)     # (B*L, A) on the MXU
        enc_sc[...] = enc.reshape(B, L, A) + b_enc_ref[...]

    feat = feat_ref[...]                                      # (B, L, F)
    h = h_sc[...]                                             # (B, H)
    c = c_sc[...]                                             # (B, H)

    # ---- additive attention ----
    dec = (jnp.dot(h, w_dec_ref[...], preferred_element_type=jnp.float32)
           + b_dec_ref[...])                                  # (B, A)
    act = jnp.maximum(enc_sc[...] + dec[:, None, :], 0.0)     # (B, L, A)
    wc = jnp.broadcast_to(w_com_ref[...][None, :, :], (B, 1, A))
    scores = jnp.einsum('bqa,bla->bql', wc, act,
                        preferred_element_type=jnp.float32)   # (B, 1, L) lane-dense
    # (b_com omitted: uniform shift, no effect after softmax)
    m = jnp.max(scores, axis=-1, keepdims=True)
    e = jnp.exp(scores - m)
    alpha = e * pl.reciprocal(jnp.sum(e, axis=-1, keepdims=True), approx=False)
    weighted = jnp.einsum('bql,blf->bqf', alpha, feat,
                          preferred_element_type=jnp.float32).reshape(B, F)

    # ---- LSTM cell (PyTorch gate order i, f, g, o) ----
    emb_t = emb_ref[0]                                        # (B, E)
    gates = (jnp.dot(emb_t, w_lih_e_ref[...], preferred_element_type=jnp.float32)
             + jnp.dot(weighted, w_lih_f_ref[...], preferred_element_type=jnp.float32)
             + jnp.dot(h, w_lhh_ref[...], preferred_element_type=jnp.float32)
             + b_lstm_ref[...])                               # (B, 4H)
    i_g = jax.nn.sigmoid(gates[:, 0:H])
    f_g = jax.nn.sigmoid(gates[:, H:2 * H])
    g_g = jnp.tanh(gates[:, 2 * H:3 * H])
    o_g = jax.nn.sigmoid(gates[:, 3 * H:4 * H])
    c_new = f_g * c + i_g * g_g
    h_new = o_g * jnp.tanh(c_new)

    # ---- top layer (dropout = identity, eval mode) ----
    pred = (jnp.dot(h_new, w_top_ref[...], preferred_element_type=jnp.float32)
            + b_top_ref[...])                                 # (B, V)

    # ---- effective-batch masking: only rows with caption_length > t advance ----
    active = len_ref[...] > t                                 # (B, 1) bool
    h_sc[...] = jnp.where(active, h_new, h)
    c_sc[...] = jnp.where(active, c_new, c)
    pred_ref[...] = jnp.where(active, pred, 0.0).reshape(1, B, V)
    alpha_ref[...] = jnp.where(active, alpha.reshape(B, L), 0.0).reshape(1, B, L)


def decoder_forward(features, captions, caption_lengths, params):
    """features: (B, F, fd, fd); captions: (B, Tc) int32; caption_lengths: (B, 1)."""
    B, F, fh, fw = features.shape
    L = fh * fw
    feat = features.reshape(B, F, L).transpose(0, 2, 1).astype(jnp.float32)  # (B, L, F)

    # init_LSTMCell uses *unsorted* features (matches the PyTorch code, where
    # h/c are computed before the sort and never re-indexed).
    mean_feat = feat.mean(axis=1)                                            # (B, F)

    lengths = caption_lengths[:, 0].astype(jnp.int32)
    sorted_idx = jnp.argsort(-lengths)                                       # descending
    lengths_s = lengths[sorted_idx]
    feat_s = feat[sorted_idx]
    captions_s = captions[sorted_idx]

    T = int(jnp.max(lengths_s))
    output_lengths = [int(x) for x in lengths_s]

    # TODO(synk): embedding gather stays in XLA.
    emb = params["embedding"][captions_s][:, :T, :].astype(jnp.float32)      # (B, T, E)
    emb_tbe = jnp.transpose(emb, (1, 0, 2))                                  # (T, B, E)

    E = emb.shape[-1]
    A = params["w_enc"].shape[1]
    H = params["w_dec"].shape[0]
    V = params["w_top"].shape[1]

    # One-time weight layout plumbing (split/transposed so the kernel never concats).
    w_ih = params["w_lstm_ih"]                # (4H, E+F) — PyTorch LSTMCell layout
    w_hh = params["w_lstm_hh"]                # (4H, H)
    w_lih_e = w_ih[:, :E].T                   # (E, 4H)
    w_lih_f = w_ih[:, E:].T                   # (F, 4H)
    w_lhh = w_hh.T                            # (H, 4H)
    b_lstm = (params["b_lstm_ih"] + params["b_lstm_hh"]).reshape(1, 4 * H)

    args = (
        feat_s, emb_tbe, lengths_s.reshape(B, 1), mean_feat,
        params["w_init_h"], params["b_init_h"].reshape(1, H),
        params["w_init_c"], params["b_init_c"].reshape(1, H),
        params["w_enc"], params["b_enc"].reshape(1, A),
        params["w_dec"], params["b_dec"].reshape(1, A),
        params["w_com"].reshape(1, A),
        w_lih_e, w_lih_f, w_lhh, b_lstm,
        params["w_top"], params["b_top"].reshape(1, V),
    )

    def full_spec(shape):
        zeros = (0,) * len(shape)
        return pl.BlockSpec(shape, lambda t, _z=zeros: _z)

    in_specs = [
        full_spec((B, L, F)),                               # features (constant)
        pl.BlockSpec((1, B, E), lambda t: (t, 0, 0)),       # embeddings, per-t slice
        full_spec((B, 1)),                                  # sorted lengths
        full_spec((B, F)),                                  # unsorted mean features
        full_spec((F, H)), full_spec((1, H)),               # init_h
        full_spec((F, H)), full_spec((1, H)),               # init_c
        full_spec((F, A)), full_spec((1, A)),               # attention_encoder
        full_spec((H, A)), full_spec((1, A)),               # attention_decoder
        full_spec((1, A)),                                  # attention_common weight
        full_spec((E, 4 * H)), full_spec((F, 4 * H)),       # LSTM W_ih (split)
        full_spec((H, 4 * H)), full_spec((1, 4 * H)),       # LSTM W_hh, bias
        full_spec((H, V)), full_spec((1, V)),               # top_layer
    ]

    preds_tbv, alphas_tbl = pl.pallas_call(
        decoder_step_kernel,
        out_shape=(
            jax.ShapeDtypeStruct((T, B, V), jnp.float32),
            jax.ShapeDtypeStruct((T, B, L), jnp.float32),
        ),
        grid_spec=pltpu.PrefetchScalarGridSpec(
            num_scalar_prefetch=0,
            grid=(T,),
            in_specs=in_specs,
            out_specs=[
                pl.BlockSpec((1, B, V), lambda t: (t, 0, 0)),
                pl.BlockSpec((1, B, L), lambda t: (t, 0, 0)),
            ],
            scratch_shapes=[
                pltpu.VMEM((B, H), jnp.float32),             # h carry
                pltpu.VMEM((B, H), jnp.float32),             # c carry
                pltpu.VMEM((B, L, A), jnp.float32),          # cached encoder projection
            ],
        ),
        compiler_params=pltpu.CompilerParams(
            dimension_semantics=("arbitrary",)),
    )(*args)

    predictions = jnp.transpose(preds_tbv, (1, 0, 2))        # (B, T, V)
    alphas = jnp.transpose(alphas_tbl, (1, 0, 2))            # (B, T, L)
    return predictions, captions_s, output_lengths, alphas, sorted_idx


def decoder_reference(features, captions, caption_lengths, params):
    # Faithful JAX port of Decoder.forward (eval mode: dropout = identity),
    # including the un-sorted h0/c0 quirk and the b_com bias.
    B, F, fh, fw = features.shape
    L = fh * fw
    feat = features.reshape(B, F, L).transpose(0, 2, 1).astype(jnp.float32)
    mean_feat = feat.mean(axis=1)
    h = mean_feat @ params["w_init_h"] + params["b_init_h"]
    c = mean_feat @ params["w_init_c"] + params["b_init_c"]
    lengths = caption_lengths[:, 0].astype(jnp.int32)
    sorted_idx = jnp.argsort(-lengths)
    lengths_s = lengths[sorted_idx]
    feat_s = feat[sorted_idx]
    captions_s = captions[sorted_idx]
    emb = params["embedding"][captions_s].astype(jnp.float32)
    T = int(jnp.max(lengths_s))
    V = params["w_top"].shape[1]
    Hh = params["w_dec"].shape[0]
    preds = jnp.zeros((B, T, V), jnp.float32)
    alphas = jnp.zeros((B, T, L), jnp.float32)
    lengths_list = [int(x) for x in lengths_s]
    for t in range(T):
        eb = sum(1 for ln in lengths_list if ln > t)
        f_t, h_t, c_t = feat_s[:eb], h[:eb], c[:eb]
        enc = f_t @ params["w_enc"] + params["b_enc"]
        dec = (h_t @ params["w_dec"] + params["b_dec"])[:, None, :]
        common = (jnp.maximum(enc + dec, 0.0) @ params["w_com"][:, None]
                  + params["b_com"]).squeeze(2)
        alpha = jax.nn.softmax(common, axis=1)
        weighted = (f_t * alpha[..., None]).sum(axis=1)
        x = jnp.concatenate([emb[:eb, t, :], weighted], axis=1)
        gates = (x @ params["w_lstm_ih"].T + params["b_lstm_ih"]
                 + h_t @ params["w_lstm_hh"].T + params["b_lstm_hh"])
        i_g = jax.nn.sigmoid(gates[:, :Hh])
        f_g = jax.nn.sigmoid(gates[:, Hh:2 * Hh])
        g_g = jnp.tanh(gates[:, 2 * Hh:3 * Hh])
        o_g = jax.nn.sigmoid(gates[:, 3 * Hh:])
        c_new = f_g * c_t + i_g * g_g
        h_new = o_g * jnp.tanh(c_new)
        pred = h_new @ params["w_top"] + params["b_top"]
        preds = preds.at[:eb, t, :].set(pred)
        alphas = alphas.at[:eb, t, :].set(alpha)
        h, c = h_new, c_new
    return preds, captions_s, lengths_list, alphas, sorted_idx


if __name__ == "__main__":
    B = 2         # batch
    F = 32        # feature_size
    FD = 4        # spatial -> num_pixels L = 16
    L = FD * FD
    E = 16        # embed_size
    H = 32        # hidden_size
    A = 32        # attention_size
    V = 50        # vocab_size
    TC = 6        # max caption length

    key = jax.random.PRNGKey(0)
    ks = jax.random.split(key, 19)

    features = jax.random.normal(ks[0], (B, F, FD, FD), dtype=jnp.float32)
    captions = jax.random.randint(ks[1], (B, TC), 0, V, dtype=jnp.int32)
    caption_lengths = jnp.array([[4], [6]], dtype=jnp.int32)

    s = 0.1
    params = {
        "embedding": jax.random.normal(ks[2], (V, E), dtype=jnp.float32) * s,
        "w_init_h": jax.random.normal(ks[3], (F, H), dtype=jnp.float32) * s,
        "b_init_h": jax.random.normal(ks[4], (H,), dtype=jnp.float32) * s,
        "w_init_c": jax.random.normal(ks[5], (F, H), dtype=jnp.float32) * s,
        "b_init_c": jax.random.normal(ks[6], (H,), dtype=jnp.float32) * s,
        "w_enc": jax.random.normal(ks[7], (F, A), dtype=jnp.float32) * s,
        "b_enc": jax.random.normal(ks[8], (A,), dtype=jnp.float32) * s,
        "w_dec": jax.random.normal(ks[9], (H, A), dtype=jnp.float32) * s,
        "b_dec": jax.random.normal(ks[10], (A,), dtype=jnp.float32) * s,
        "w_com": jax.random.normal(ks[11], (A,), dtype=jnp.float32) * s,
        "b_com": jax.random.normal(ks[12], (1,), dtype=jnp.float32) * s,
        "w_lstm_ih": jax.random.normal(ks[13], (4 * H, E + F), dtype=jnp.float32) * s,
        "w_lstm_hh": jax.random.normal(ks[14], (4 * H, H), dtype=jnp.float32) * s,
        "b_lstm_ih": jax.random.normal(ks[15], (4 * H,), dtype=jnp.float32) * s,
        "b_lstm_hh": jax.random.normal(ks[16], (4 * H,), dtype=jnp.float32) * s,
        "w_top": jax.random.normal(ks[17], (H, V), dtype=jnp.float32) * s,
        "b_top": jax.random.normal(ks[18], (V,), dtype=jnp.float32) * s,
    }

    preds, caps_s, out_lens, alphas, sidx = decoder_forward(
        features, captions, caption_lengths, params)
    jax.block_until_ready((preds, alphas))

    ref_p, ref_caps, ref_lens, ref_a, ref_sidx = decoder_reference(
        features, captions, caption_lengths, params)

    assert out_lens == ref_lens
    assert jnp.array_equal(sidx, ref_sidx)
    assert jnp.array_equal(caps_s, ref_caps)
    assert jnp.allclose(preds, ref_p, atol=1e-4, rtol=1e-4), \
        float(jnp.max(jnp.abs(preds - ref_p)))
    assert jnp.allclose(alphas, ref_a, atol=1e-4, rtol=1e-4), \
        float(jnp.max(jnp.abs(alphas - ref_a)))

    print("KERNEL_OK")
</pallas_src>

<mosaic_0001>
module attributes {stable_mosaic.version = 11 : i64} {
  func.func @decoder_step_kernel(%arg0: i32, %arg1: memref<2x16x32xf32, #tpu.memory_space<vmem>>, %arg2: memref<1x2x16xf32, #tpu.memory_space<vmem>>, %arg3: memref<2x1xi32, #tpu.memory_space<vmem>>, %arg4: memref<2x32xf32, #tpu.memory_space<vmem>>, %arg5: memref<32x32xf32, #tpu.memory_space<vmem>>, %arg6: memref<1x32xf32, #tpu.memory_space<vmem>>, %arg7: memref<32x32xf32, #tpu.memory_space<vmem>>, %arg8: memref<1x32xf32, #tpu.memory_space<vmem>>, %arg9: memref<32x32xf32, #tpu.memory_space<vmem>>, %arg10: memref<1x32xf32, #tpu.memory_space<vmem>>, %arg11: memref<32x32xf32, #tpu.memory_space<vmem>>, %arg12: memref<1x32xf32, #tpu.memory_space<vmem>>, %arg13: memref<1x32xf32, #tpu.memory_space<vmem>>, %arg14: memref<16x128xf32, #tpu.memory_space<vmem>>, %arg15: memref<32x128xf32, #tpu.memory_space<vmem>>, %arg16: memref<32x128xf32, #tpu.memory_space<vmem>>, %arg17: memref<1x128xf32, #tpu.memory_space<vmem>>, %arg18: memref<32x50xf32, #tpu.memory_space<vmem>>, %arg19: memref<1x50xf32, #tpu.memory_space<vmem>>, %arg20: memref<1x2x50xf32, #tpu.memory_space<vmem>>, %arg21: memref<1x2x16xf32, #tpu.memory_space<vmem>>, %arg22: memref<2x32xf32, #tpu.memory_space<vmem>>, %arg23: memref<2x32xf32, #tpu.memory_space<vmem>>, %arg24: memref<2x16x32xf32, #tpu.memory_space<vmem>>) attributes {dimension_semantics = [#tpu.dimension_semantics<arbitrary>], iteration_bounds = array<i64: 6>, scalar_prefetch = 0 : i64, scratch_operands = 3 : i64, tpu.core_type = #tpu.core_type<tc>, window_params = [{pipeline_mode = #tpu.pipeline_mode<synchronous>, transform_indices = @transform_0, window_bounds = array<i64: 2, 16, 32>}, {transform_indices = @transform_1, window_bounds = array<i64: 1, 2, 16>}, {pipeline_mode = #tpu.pipeline_mode<synchronous>, transform_indices = @transform_2, window_bounds = array<i64: 2, 1>}, {pipeline_mode = #tpu.pipeline_mode<synchronous>, transform_indices = @transform_3, window_bounds = array<i64: 2, 32>}, {pipeline_mode = #tpu.pipeline_mode<synchronous>, transform_indices = @transform_4, window_bounds = array<i64: 32, 32>}, {pipeline_mode = #tpu.pipeline_mode<synchronous>, transform_indices = @transform_5, window_bounds = array<i64: 1, 32>}, {pipeline_mode = #tpu.pipeline_mode<synchronous>, transform_indices = @transform_6, window_bounds = array<i64: 32, 32>}, {pipeline_mode = #tpu.pipeline_mode<synchronous>, transform_indices = @transform_7, window_bounds = array<i64: 1, 32>}, {pipeline_mode = #tpu.pipeline_mode<synchronous>, transform_indices = @transform_8, window_bounds = array<i64: 32, 32>}, {pipeline_mode = #tpu.pipeline_mode<synchronous>, transform_indices = @transform_9, window_bounds = array<i64: 1, 32>}, {pipeline_mode = #tpu.pipeline_mode<synchronous>, transform_indices = @transform_10, window_bounds = array<i64: 32, 32>}, {pipeline_mode = #tpu.pipeline_mode<synchronous>, transform_indices = @transform_11, window_bounds = array<i64: 1, 32>}, {pipeline_mode = #tpu.pipeline_mode<synchronous>, transform_indices = @transform_12, window_bounds = array<i64: 1, 32>}, {pipeline_mode = #tpu.pipeline_mode<synchronous>, transform_indices = @transform_13, window_bounds = array<i64: 16, 128>}, {pipeline_mode = #tpu.pipeline_mode<synchronous>, transform_indices = @transform_14, window_bounds = array<i64: 32, 128>}, {pipeline_mode = #tpu.pipeline_mode<synchronous>, transform_indices = @transform_15, window_bounds = array<i64: 32, 128>}, {pipeline_mode = #tpu.pipeline_mode<synchronous>, transform_indices = @transform_16, window_bounds = array<i64: 1, 128>}, {pipeline_mode = #tpu.pipeline_mode<synchronous>, transform_indices = @transform_17, window_bounds = array<i64: 32, 50>}, {pipeline_mode = #tpu.pipeline_mode<synchronous>, transform_indices = @transform_18, window_bounds = array<i64: 1, 50>}, {transform_indices = @transform_19, window_bounds = array<i64: 1, 2, 50>}, {transform_indices = @transform_20, window_bounds = array<i64: 1, 2, 16>}]} {
    %c0_i32 = arith.constant 0 : i32
    %0 = arith.cmpi eq, %arg0, %c0_i32 : i32
    %1 = arith.extui %0 : i1 to i32
    %c0_i32_0 = arith.constant 0 : i32
    %2 = arith.cmpi ne, %1, %c0_i32_0 : i32
    scf.if %2 {
      %c0_57 = arith.constant 0 : index
      %c0_58 = arith.constant 0 : index
      %101 = vector.load %arg4[%c0_57, %c0_58] : memref<2x32xf32, #tpu.memory_space<vmem>>, vector<2x32xf32>
      %c0_59 = arith.constant 0 : index
      %c0_60 = arith.constant 0 : index
      %102 = vector.load %arg5[%c0_59, %c0_60] : memref<32x32xf32, #tpu.memory_space<vmem>>, vector<32x32xf32>
      %cst_61 = arith.constant dense<0.000000e+00> : vector<2x32xf32>
      %103 = tpu.matmul %101, %102, %cst_61 {dimension_numbers = #tpu.dot_dimension_numbers<[1], [0], [0], [1], [0, 0, 1, 1], [], []>} : vector<2x32xf32>, vector<32x32xf32>, vector<2x32xf32> -> vector<2x32xf32>
      %c0_62 = arith.constant 0 : index
      %c0_63 = arith.constant 0 : index
      %104 = vector.load %arg6[%c0_62, %c0_63] : memref<1x32xf32, #tpu.memory_space<vmem>>, vector<1x32xf32>
      %105 = vector.broadcast %104 : vector<1x32xf32> to vector<2x32xf32>
      %106 = arith.addf %103, %105 : vector<2x32xf32>
      %c0_64 = arith.constant 0 : index
      %c0_65 = arith.constant 0 : index
      %107 = vector.load %arg22[%c0_64, %c0_65] : memref<2x32xf32, #tpu.memory_space<vmem>>, vector<2x32xf32>
      tpu.vector_store %arg22[%c0_64, %c0_65], %106 {strides = array<i32>} : memref<2x32xf32, #tpu.memory_space<vmem>>, vector<2x32xf32>,
      %c0_66 = arith.constant 0 : index
      %c0_67 = arith.constant 0 : index
      %108 = vector.load %arg7[%c0_66, %c0_67] : memref<32x32xf32, #tpu.memory_space<vmem>>, vector<32x32xf32>
      %cst_68 = arith.constant dense<0.000000e+00> : vector<2x32xf32>
      %109 = tpu.matmul %101, %108, %cst_68 {dimension_numbers = #tpu.dot_dimension_numbers<[1], [0], [0], [1], [0, 0, 1, 1], [], []>} : vector<2x32xf32>, vector<32x32xf32>, vector<2x32xf32> -> vector<2x32xf32>
      %c0_69 = arith.constant 0 : index
      %c0_70 = arith.constant 0 : index
      %110 = vector.load %arg8[%c0_69, %c0_70] : memref<1x32xf32, #tpu.memory_space<vmem>>, vector<1x32xf32>
      %111 = vector.broadcast %110 : vector<1x32xf32> to vector<2x32xf32>
      %112 = arith.addf %109, %111 : vector<2x32xf32>
      %c0_71 = arith.constant 0 : index
      %c0_72 = arith.constant 0 : index
      %113 = vector.load %arg23[%c0_71, %c0_72] : memref<2x32xf32, #tpu.memory_space<vmem>>, vector<2x32xf32>
      tpu.vector_store %arg23[%c0_71, %c0_72], %112 {strides = array<i32>} : memref<2x32xf32, #tpu.memory_space<vmem>>, vector<2x32xf32>,
      %c0_73 = arith.constant 0 : index
      %c0_74 = arith.constant 0 : index
      %c0_75 = arith.constant 0 : index
      %114 = vector.load %arg1[%c0_73, %c0_74, %c0_75] : memref<2x16x32xf32, #tpu.memory_space<vmem>>, vector<2x16x32xf32>
      %115 = vector.shape_cast %114 : vector<2x16x32xf32> to vector<32x32xf32>
      %c0_76 = arith.constant 0 : index
      %c0_77 = arith.constant 0 : index
      %116 = vector.load %arg9[%c0_76, %c0_77] : memref<32x32xf32, #tpu.memory_space<vmem>>, vector<32x32xf32>
      %cst_78 = arith.constant dense<0.000000e+00> : vector<32x32xf32>
      %117 = tpu.matmul %115, %116, %cst_78 {dimension_numbers = #tpu.dot_dimension_numbers<[1], [0], [0], [1], [0, 0, 1, 1], [], []>} : vector<32x32xf32>, vector<32x32xf32>, vector<32x32xf32> -> vector<32x32xf32>
      %118 = vector.shape_cast %117 : vector<32x32xf32> to vector<2x16x32xf32>
      %c0_79 = arith.constant 0 : index
      %c0_80 = arith.constant 0 : index
      %119 = vector.load %arg10[%c0_79, %c0_80] : memref<1x32xf32, #tpu.memory_space<vmem>>, vector<1x32xf32>
      %120 = vector.shape_cast %119 : vector<1x32xf32> to vector<1x1x32xf32>
      %121 = vector.broadcast %120 : vector<1x1x32xf32> to vector<2x16x32xf32>
      %122 = arith.addf %118, %121 : vector<2x16x32xf32>
      %c0_81 = arith.constant 0 : index
      %c0_82 = arith.constant 0 : index
      %c0_83 = arith.constant 0 : index
      %123 = vector.load %arg24[%c0_81, %c0_82, %c0_83] : memref<2x16x32xf32, #tpu.memory_space<vmem>>, vector<2x16x32xf32>
      tpu.vector_store %arg24[%c0_81, %c0_82, %c0_83], %122 {strides = array<i32>} : memref<2x16x32xf32, #tpu.memory_space<vmem>>, vector<2x16x32xf32>,
    } else {
    }
    %c0 = arith.constant 0 : index
    %c0_1 = arith.constant 0 : index
    %c0_2 = arith.constant 0 : index
    %3 = vector.load %arg1[%c0, %c0_1, %c0_2] : memref<2x16x32xf32, #tpu.memory_space<vmem>>, vector<2x16x32xf32>
    %c0_3 = arith.constant 0 : index
    %c0_4 = arith.constant 0 : index
    %4 = vector.load %arg22[%c0_3, %c0_4] : memref<2x32xf32, #tpu.memory_space<vmem>>, vector<2x32xf32>
    %c0_5 = arith.constant 0 : index
    %c0_6 = arith.constant 0 : index
    %5 = vector.load %arg23[%c0_5, %c0_6] : memref<2x32xf32, #tpu.memory_space<vmem>>, vector<2x32xf32>
    %c0_7 = arith.constant 0 : index
    %c0_8 = arith.constant 0 : index
    %6 = vector.load %arg11[%c0_7, %c0_8] : memref<32x32xf32, #tpu.memory_space<vmem>>, vector<32x32xf32>
    %cst = arith.constant dense<0.000000e+00> : vector<2x32xf32>
    %7 = tpu.matmul %4, %6, %cst {dimension_numbers = #tpu.dot_dimension_numbers<[1], [0], [0], [1], [0, 0, 1, 1], [], []>} : vector<2x32xf32>, vector<32x32xf32>, vector<2x32xf32> -> vector<2x32xf32>
    %c0_9 = arith.constant 0 : index
    %c0_10 = arith.constant 0 : index
    %8 = vector.load %arg12[%c0_9, %c0_10] : memref<1x32xf32, #tpu.memory_space<vmem>>, vector<1x32xf32>
    %9 = vector.broadcast %8 : vector<1x32xf32> to vector<2x32xf32>
    %10 = arith.addf %7, %9 : vector<2x32xf32>
    %c0_11 = arith.constant 0 : index
    %c0_12 = arith.constant 0 : index
    %c0_13 = arith.constant 0 : index
    %11 = vector.load %arg24[%c0_11, %c0_12, %c0_13] : memref<2x16x32xf32, #tpu.memory_space<vmem>>, vector<2x16x32xf32>
    %12 = vector.shape_cast %10 : vector<2x32xf32> to vector<2x1x32xf32>
    %13 = vector.broadcast %12 : vector<2x1x32xf32> to vector<2x16x32xf32>
    %14 = arith.addf %11, %13 : vector<2x16x32xf32>
    %cst_14 = arith.constant 0.000000e+00 : f32
    %15 = vector.broadcast %cst_14 : f32 to vector<2x16x32xf32>
    %16 = arith.maximumf %14, %15 : vector<2x16x32xf32>
    %c0_15 = arith.constant 0 : index
    %c0_16 = arith.constant 0 : index
    %17 = vector.load %arg13[%c0_15, %c0_16] : memref<1x32xf32, #tpu.memory_space<vmem>>, vector<1x32xf32>
    %18 = vector.shape_cast %17 : vector<1x32xf32> to vector<1x1x32xf32>
    %19 = vector.shape_cast %18 : vector<1x1x32xf32> to vector<1x1x32xf32>
    %20 = vector.broadcast %19 : vector<1x1x32xf32> to vector<2x1x32xf32>
    "tpu.trace_start"() <{level = 10 : i32, message = "bqa,bla->bql"}> : () -> ()
    %cst_17 = arith.constant dense<0.000000e+00> : vector<2x1x16xf32>
    %21 = tpu.matmul %20, %16, %cst_17 {dimension_numbers = #tpu.dot_dimension_numbers<[2], [2], [1], [1], [0, 0, 0, 1, 1, 1], [0], [0]>} : vector<2x1x32xf32>, vector<2x16x32xf32>, vector<2x1x16xf32> -> vector<2x1x16xf32>
    "tpu.trace_stop"() : () -> ()
    %cst_18 = arith.constant dense<0xFF800000> : vector<2x1xf32>
    %22 = vector.multi_reduction <maximumf>, %21, %cst_18 [2] : vector<2x1x16xf32> to vector<2x1xf32>
    %23 = vector.shape_cast %22 : vector<2x1xf32> to vector<2x1x1xf32>
    %24 = vector.broadcast %23 : vector<2x1x1xf32> to vector<2x1x16xf32>
    %25 = arith.subf %21, %24 : vector<2x1x16xf32>
    %26 = math.exp %25 : vector<2x1x16xf32>
    %cst_19 = arith.constant dense<0.000000e+00> : vector<2x1xf32>
    %27 = vector.multi_reduction <add>, %26, %cst_19 [2] : vector<2x1x16xf32> to vector<2x1xf32>
    %28 = vector.shape_cast %27 : vector<2x1xf32> to vector<2x1x1xf32>
    %29 = tpu.reciprocal %28 : vector<2x1x1xf32> -> vector<2x1x1xf32>
    %30 = vector.broadcast %29 : vector<2x1x1xf32> to vector<2x1x16xf32>
    %31 = arith.mulf %26, %30 : vector<2x1x16xf32>
    "tpu.trace_start"() <{level = 10 : i32, message = "bql,blf->bqf"}> : () -> ()
    %cst_20 = arith.constant dense<0.000000e+00> : vector<2x1x32xf32>
    %32 = tpu.matmul %31, %3, %cst_20 {dimension_numbers = #tpu.dot_dimension_numbers<[2], [1], [1], [2], [0, 0, 0, 1, 1, 2], [0], [0]>} : vector<2x1x16xf32>, vector<2x16x32xf32>, vector<2x1x32xf32> -> vector<2x1x32xf32>
    "tpu.trace_stop"() : () -> ()
    %33 = vector.shape_cast %32 : vector<2x1x32xf32> to vector<2x32xf32>
    %c0_21 = arith.constant 0 : index
    %c0_22 = arith.constant 0 : index
    %c0_23 = arith.constant 0 : index
    %34 = vector.load %arg2[%c0_21, %c0_22, %c0_23] : memref<1x2x16xf32, #tpu.memory_space<vmem>>, vector<1x2x16xf32>
    %35 = vector.shape_cast %34 : vector<1x2x16xf32> to vector<2x16xf32>
    %c0_24 = arith.constant 0 : index
    %c0_25 = arith.constant 0 : index
    %36 = vector.load %arg14[%c0_24, %c0_25] : memref<16x128xf32, #tpu.memory_space<vmem>>, vector<16x128xf32>
    %cst_26 = arith.constant dense<0.000000e+00> : vector<2x128xf32>
    %37 = tpu.matmul %35, %36, %cst_26 {dimension_numbers = #tpu.dot_dimension_numbers<[1], [0], [0], [1], [0, 0, 1, 1], [], []>} : vector<2x16xf32>, vector<16x128xf32>, vector<2x128xf32> -> vector<2x128xf32>
    %c0_27 = arith.constant 0 : index
    %c0_28 = arith.constant 0 : index
    %38 = vector.load %arg15[%c0_27, %c0_28] : memref<32x128xf32, #tpu.memory_space<vmem>>, vector<32x128xf32>
    %cst_29 = arith.constant dense<0.000000e+00> : vector<2x128xf32>
    %39 = tpu.matmul %33, %38, %cst_29 {dimension_numbers = #tpu.dot_dimension_numbers<[1], [0], [0], [1], [0, 0, 1, 1], [], []>} : vector<2x32xf32>, vector<32x128xf32>, vector<2x128xf32> -> vector<2x128xf32>
    %40 = arith.addf %37, %39 : vector<2x128xf32>
    %c0_30 = arith.constant 0 : index
    %c0_31 = arith.constant 0 : index
    %41 = vector.load %arg16[%c0_30, %c0_31] : memref<32x128xf32, #tpu.memory_space<vmem>>, vector<32x128xf32>
    %cst_32 = arith.constant dense<0.000000e+00> : vector<2x128xf32>
    %42 = tpu.matmul %4, %41, %cst_32 {dimension_numbers = #tpu.dot_dimension_numbers<[1], [0], [0], [1], [0, 0, 1, 1], [], []>} : vector<2x32xf32>, vector<32x128xf32>, vector<2x128xf32> -> vector<2x128xf32>
    %43 = arith.addf %40, %42 : vector<2x128xf32>
    %c0_33 = arith.constant 0 : index
    %c0_34 = arith.constant 0 : index
    %44 = vector.load %arg17[%c0_33, %c0_34] : memref<1x128xf32, #tpu.memory_space<vmem>>, vector<1x128xf32>
    %45 = vector.broadcast %44 : vector<1x128xf32> to vector<2x128xf32>
    %46 = arith.addf %43, %45 : vector<2x128xf32>
    %47 = vector.extract_strided_slice %46 {offsets = [0, 0], sizes = [2, 32], strides = [1, 1]} : vector<2x128xf32> to vector<2x32xf32>
    %48 = arith.negf %47 : vector<2x32xf32>
    %49 = math.exp %48 : vector<2x32xf32>
    %cst_35 = arith.constant 1.000000e+00 : f32
    %50 = vector.broadcast %cst_35 : f32 to vector<2x32xf32>
    %51 = arith.addf %50, %49 : vector<2x32xf32>
    %52 = arith.divf %50, %51 : vector<2x32xf32>
    %53 = vector.extract_strided_slice %46 {offsets = [0, 32], sizes = [2, 32], strides = [1, 1]} : vector<2x128xf32> to vector<2x32xf32>
    %54 = arith.negf %53 : vector<2x32xf32>
    %55 = math.exp %54 : vector<2x32xf32>
    %cst_36 = arith.constant 1.000000e+00 : f32
    %56 = vector.broadcast %cst_36 : f32 to vector<2x32xf32>
    %57 = arith.addf %56, %55 : vector<2x32xf32>
    %58 = arith.divf %56, %57 : vector<2x32xf32>
    %59 = vector.extract_strided_slice %46 {offsets = [0, 64], sizes = [2, 32], strides = [1, 1]} : vector<2x128xf32> to vector<2x32xf32>
    %60 = math.tanh %59 : vector<2x32xf32>
    %61 = vector.extract_strided_slice %46 {offsets = [0, 96], sizes = [2, 32], strides = [1, 1]} : vector<2x128xf32> to vector<2x32xf32>
    %62 = arith.negf %61 : vector<2x32xf32>
    %63 = math.exp %62 : vector<2x32xf32>
    %cst_37 = arith.constant 1.000000e+00 : f32
    %64 = vector.broadcast %cst_37 : f32 to vector<2x32xf32>
    %65 = arith.addf %64, %63 : vector<2x32xf32>
    %66 = arith.divf %64, %65 : vector<2x32xf32>
    %67 = arith.mulf %58, %5 : vector<2x32xf32>
    %68 = arith.mulf %52, %60 : vector<2x32xf32>
    %69 = arith.addf %67, %68 : vector<2x32xf32>
    %70 = math.tanh %69 : vector<2x32xf32>
    %71 = arith.mulf %66, %70 : vector<2x32xf32>
    %c0_38 = arith.constant 0 : index
    %c0_39 = arith.constant 0 : index
    %72 = vector.load %arg18[%c0_38, %c0_39] : memref<32x50xf32, #tpu.memory_space<vmem>>, vector<32x50xf32>
    %cst_40 = arith.constant dense<0.000000e+00> : vector<2x50xf32>
    %73 = tpu.matmul %71, %72, %cst_40 {dimension_numbers = #tpu.dot_dimension_numbers<[1], [0], [0], [1], [0, 0, 1, 1], [], []>} : vector<2x32xf32>, vector<32x50xf32>, vector<2x50xf32> -> vector<2x50xf32>
    %c0_41 = arith.constant 0 : index
    %c0_42 = arith.constant 0 : index
    %74 = vector.load %arg19[%c0_41, %c0_42] : memref<1x50xf32, #tpu.memory_space<vmem>>, vector<1x50xf32>
    %75 = vector.broadcast %74 : vector<1x50xf32> to vector<2x50xf32>
    %76 = arith.addf %73, %75 : vector<2x50xf32>
    %c0_43 = arith.constant 0 : index
    %c0_44 = arith.constant 0 : index
    %77 = vector.load %arg3[%c0_43, %c0_44] : memref<2x1xi32, #tpu.memory_space<vmem>>, vector<2x1xi32>
    %78 = vector.broadcast %arg0 : i32 to vector<2x1xi32>
    %79 = arith.cmpi sgt, %77, %78 : vector<2x1xi32>
    %80 = vector.shape_cast %79 : vector<2x1xi1> to vector<2x1xi1>
    %81 = vector.broadcast %80 : vector<2x1xi1> to vector<2x32xi1>
    %82 = arith.select %81, %71, %4 : vector<2x32xi1>, vector<2x32xf32>
    %c0_45 = arith.constant 0 : index
    %c0_46 = arith.constant 0 : index
    %83 = vector.load %arg22[%c0_45, %c0_46] : memref<2x32xf32, #tpu.memory_space<vmem>>, vector<2x32xf32>
    tpu.vector_store %arg22[%c0_45, %c0_46], %82 {strides = array<i32>} : memref<2x32xf32, #tpu.memory_space<vmem>>, vector<2x32xf32>,
    %84 = vector.shape_cast %79 : vector<2x1xi1> to vector<2x1xi1>
    %85 = vector.broadcast %84 : vector<2x1xi1> to vector<2x32xi1>
    %86 = arith.select %85, %69, %5 : vector<2x32xi1>, vector<2x32xf32>
    %c0_47 = arith.constant 0 : index
    %c0_48 = arith.constant 0 : index
    %87 = vector.load %arg23[%c0_47, %c0_48] : memref<2x32xf32, #tpu.memory_space<vmem>>, vector<2x32xf32>
    tpu.vector_store %arg23[%c0_47, %c0_48], %86 {strides = array<i32>} : memref<2x32xf32, #tpu.memory_space<vmem>>, vector<2x32xf32>,
    %cst_49 = arith.constant 0.000000e+00 : f32
    %88 = vector.shape_cast %79 : vector<2x1xi1> to vector<2x1xi1>
    %89 = vector.broadcast %88 : vector<2x1xi1> to vector<2x50xi1>
    %90 = vector.broadcast %cst_49 : f32 to vector<2x50xf32>
    %91 = arith.select %89, %76, %90 : vector<2x50xi1>, vector<2x50xf32>
    %92 = vector.shape_cast %91 : vector<2x50xf32> to vector<1x2x50xf32>
    %c0_50 = arith.constant 0 : index
    %c0_51 = arith.constant 0 : index
    %c0_52 = arith.constant 0 : index
    %93 = vector.load %arg20[%c0_50, %c0_51, %c0_52] : memref<1x2x50xf32, #tpu.memory_space<vmem>>, vector<1x2x50xf32>
    tpu.vector_store %arg20[%c0_50, %c0_51, %c0_52], %92 {strides = array<i32>} : memref<1x2x50xf32, #tpu.memory_space<vmem>>, vector<1x2x50xf32>,
    %94 = vector.shape_cast %31 : vector<2x1x16xf32> to vector<2x16xf32>
    %cst_53 = arith.constant 0.000000e+00 : f32
    %95 = vector.shape_cast %79 : vector<2x1xi1> to vector<2x1xi1>
    %96 = vector.broadcast %95 : vector<2x1xi1> to vector<2x16xi1>
    %97 = vector.broadcast %cst_53 : f32 to vector<2x16xf32>
    %98 = arith.select %96, %94, %97 : vector<2x16xi1>, vector<2x16xf32>
    %99 = vector.shape_cast %98 : vector<2x16xf32> to vector<1x2x16xf32>
    %c0_54 = arith.constant 0 : index
    %c0_55 = arith.constant 0 : index
    %c0_56 = arith.constant 0 : index
    %100 = vector.load %arg21[%c0_54, %c0_55, %c0_56] : memref<1x2x16xf32, #tpu.memory_space<vmem>>, vector<1x2x16xf32>
    tpu.vector_store %arg21[%c0_54, %c0_55, %c0_56], %99 {strides = array<i32>} : memref<1x2x16xf32, #tpu.memory_space<vmem>>, vector<1x2x16xf32>,
    return
  }
  func.func @transform_0(%arg0: i32) -> (i32, i32, i32) {
    %c0_i32 = arith.constant 0 : i32
    %c0_i32_0 = arith.constant 0 : i32
    %c0_i32_1 = arith.constant 0 : i32
    %c0_i32_2 = arith.constant 0 : i32
    return %c0_i32, %c0_i32_0, %c0_i32_1 : i32, i32, i32
  }
  func.func @transform_1(%arg0: i32) -> (i32, i32, i32) {
    %c0_i32 = arith.constant 0 : i32
    %c0_i32_0 = arith.constant 0 : i32
    %c0_i32_1 = arith.constant 0 : i32
    return %arg0, %c0_i32, %c0_i32_0 : i32, i32, i32
  }
  func.func @transform_2(%arg0: i32) -> (i32, i32) {
    %c0_i32 = arith.constant 0 : i32
    %c0_i32_0 = arith.constant 0 : i32
    %c0_i32_1 = arith.constant 0 : i32
    return %c0_i32, %c0_i32_0 : i32, i32
  }
  func.func @transform_3(%arg0: i32) -> (i32, i32) {
    %c0_i32 = arith.constant 0 : i32
    %c0_i32_0 = arith.constant 0 : i32
    %c0_i32_1 = arith.constant 0 : i32
    return %c0_i32, %c0_i32_0 : i32, i32
  }
  func.func @transform_4(%arg0: i32) -> (i32, i32) {
    %c0_i32 = arith.constant 0 : i32
    %c0_i32_0 = arith.constant 0 : i32
    %c0_i32_1 = arith.constant 0 : i32
    return %c0_i32, %c0_i32_0 : i32, i32
  }
  func.func @transform_5(%arg0: i32) -> (i32, i32) {
    %c0_i32 = arith.constant 0 : i32
    %c0_i32_0 = arith.constant 0 : i32
    %c0_i32_1 = arith.constant 0 : i32
    return %c0_i32, %c0_i32_0 : i32, i32
  }
  func.func @transform_6(%arg0: i32) -> (i32, i32) {
    %c0_i32 = arith.constant 0 : i32
    %c0_i32_0 = arith.constant 0 : i32
    %c0_i32_1 = arith.constant 0 : i32
    return %c0_i32, %c0_i32_0 : i32, i32
  }
  func.func @transform_7(%arg0: i32) -> (i32, i32) {
    %c0_i32 = arith.constant 0 : i32
    %c0_i32_0 = arith.constant 0 : i32
    %c0_i32_1 = arith.constant 0 : i32
    return %c0_i32, %c0_i32_0 : i32, i32
  }
  func.func @transform_8(%arg0: i32) -> (i32, i32) {
    %c0_i32 = arith.constant 0 : i32
    %c0_i32_0 = arith.constant 0 : i32
    %c0_i32_1 = arith.constant 0 : i32
    return %c0_i32, %c0_i32_0 : i32, i32
  }
  func.func @transform_9(%arg0: i32) -> (i32, i32) {
    %c0_i32 = arith.constant 0 : i32
    %c0_i32_0 = arith.constant 0 : i32
    %c0_i32_1 = arith.constant 0 : i32
    return %c0_i32, %c0_i32_0 : i32, i32
  }
  func.func @transform_10(%arg0: i32) -> (i32, i32) {
    %c0_i32 = arith.constant 0 : i32
    %c0_i32_0 = arith.constant 0 : i32
    %c0_i32_1 = arith.constant 0 : i32
    return %c0_i32, %c0_i32_0 : i32, i32
  }
  func.func @transform_11(%arg0: i32) -> (i32, i32) {
    %c0_i32 = arith.constant 0 : i32
    %c0_i32_0 = arith.constant 0 : i32
    %c0_i32_1 = arith.constant 0 : i32
    return %c0_i32, %c0_i32_0 : i32, i32
  }
  func.func @transform_12(%arg0: i32) -> (i32, i32) {
    %c0_i32 = arith.constant 0 : i32
    %c0_i32_0 = arith.constant 0 : i32
    %c0_i32_1 = arith.constant 0 : i32
    return %c0_i32, %c0_i32_0 : i32, i32
  }
  func.func @transform_13(%arg0: i32) -> (i32, i32) {
    %c0_i32 = arith.constant 0 : i32
    %c0_i32_0 = arith.constant 0 : i32
    %c0_i32_1 = arith.constant 0 : i32
    return %c0_i32, %c0_i32_0 : i32, i32
  }
  func.func @transform_14(%arg0: i32) -> (i32, i32) {
    %c0_i32 = arith.constant 0 : i32
    %c0_i32_0 = arith.constant 0 : i32
    %c0_i32_1 = arith.constant 0 : i32
    return %c0_i32, %c0_i32_0 : i32, i32
  }
  func.func @transform_15(%arg0: i32) -> (i32, i32) {
    %c0_i32 = arith.constant 0 : i32
    %c0_i32_0 = arith.constant 0 : i32
    %c0_i32_1 = arith.constant 0 : i32
    return %c0_i32, %c0_i32_0 : i32, i32
  }
  func.func @transform_16(%arg0: i32) -> (i32, i32) {
    %c0_i32 = arith.constant 0 : i32
    %c0_i32_0 = arith.constant 0 : i32
    %c0_i32_1 = arith.constant 0 : i32
    return %c0_i32, %c0_i32_0 : i32, i32
  }
  func.func @transform_17(%arg0: i32) -> (i32, i32) {
    %c0_i32 = arith.constant 0 : i32
    %c0_i32_0 = arith.constant 0 : i32
    %c0_i32_1 = arith.constant 0 : i32
    return %c0_i32, %c0_i32_0 : i32, i32
  }
  func.func @transform_18(%arg0: i32) -> (i32, i32) {
    %c0_i32 = arith.constant 0 : i32
    %c0_i32_0 = arith.constant 0 : i32
    %c0_i32_1 = arith.constant 0 : i32
    return %c0_i32, %c0_i32_0 : i32, i32
  }
  func.func @transform_19(%arg0: i32) -> (i32, i32, i32) {
    %c0_i32 = arith.constant 0 : i32
    %c0_i32_0 = arith.constant 0 : i32
    %c0_i32_1 = arith.constant 0 : i32
    return %arg0, %c0_i32, %c0_i32_0 : i32, i32, i32
  }
  func.func @transform_20(%arg0: i32) -> (i32, i32, i32) {
    %c0_i32 = arith.constant 0 : i32
    %c0_i32_0 = arith.constant 0 : i32
    %c0_i32_1 = arith.constant 0 : i32
    return %arg0, %c0_i32, %c0_i32_0 : i32, i32, i32
  }
}

</mosaic_0001>

<bundles_post_ra>
// kernel: tpu_custom_call.1
= control target key start
LH: loop header
LB: loop body
LE: loop exit
PB: predicated region body
PF: predicated region fallthrough
CT: control target
= control target key end

     0   :  { %s4121_s0 = inlined_call_operand.hbm [shape: f32[2,16,32], index: 0, kind: input, shape index: {}]   ;;  %s4122_s1 = inlined_call_operand.hbm [shape: f32[6,2,16], index: 1, kind: input, shape index: {}]   ;;  %s4123_s2 = inlined_call_operand.vmem [shape: s32[2,1], index: 2, kind: input, shape index: {}]   ;;  %s4124_s3 = inlined_call_operand.hbm [shape: f32[2,32], index: 3, kind: input, shape index: {}]   ;;  %s4125_s4 = inlined_call_operand.hbm [shape: f32[32,32], index: 4, kind: input, shape index: {}]   ;;  %s4126_s5 = inlined_call_operand.hbm [shape: f32[1,32], index: 5, kind: input, shape index: {}]   ;;  %s4127_s6 = inlined_call_operand.hbm [shape: f32[32,32], index: 6, kind: input, shape index: {}]   ;;  %s4128_s7 = inlined_call_operand.hbm [shape: f32[1,32], index: 7, kind: input, shape index: {}]   ;;  %s4129_s8 = inlined_call_operand.vmem [shape: f32[32,32], index: 8, kind: input, shape index: {}]   ;;  %s4130_s9 = inlined_call_operand.hbm [shape: f32[1,32], index: 9, kind: input, shape index: {}]   ;;  %s4131_s10 = inlined_call_operand.hbm [shape: f32[32,32], index: 10, kind: input, shape index: {}]   ;;  %s4132_s11 = inlined_call_operand.hbm [shape: f32[1,32], index: 11, kind: input, shape index: {}]   ;;  %s4133_s12 = inlined_call_operand.hbm [shape: f32[1,32], index: 12, kind: input, shape index: {}]   ;;  %s4134_s13 = inlined_call_operand.hbm [shape: f32[16,128], index: 13, kind: input, shape index: {}]   ;;  %s4135_s14 = inlined_call_operand.hbm [shape: f32[32,128], index: 14, kind: input, shape index: {}]   ;;  %s4136_s15 = inlined_call_operand.hbm [shape: f32[32,128], index: 15, kind: input, shape index: {}]   ;;  %s4137_s16 = inlined_call_operand.hbm [shape: f32[1,128], index: 16, kind: input, shape index: {}]   ;;  %s4138_s17 = inlined_call_operand.vmem [shape: f32[32,50], index: 17, kind: input, shape index: {}]   ;;  %s4139_s18 = inlined_call_operand.vmem [shape: f32[1,50], index: 18, kind: input, shape index: {}]   ;;  %s4140_s19 = inlined_call_operand.hbm [shape: f32[6,2,50], index: 19, kind: output, shape index: {0}]   ;;  %s4141_s20 = inlined_call_operand.hbm [shape: f32[6,2,16], index: 20, kind: output, shape index: {1}]  }
   0x1   :  { %4165 = sst [smem:[#allocation46_spill]] %s4121_s0 }
   0x2   :  { %4166 = sst [smem:[#allocation47_spill]] %s4122_s1 }
   0x3   :  { %4167 = sst [smem:[#allocation48_spill]] %s4123_s2 }
   0x4   :  { %4168 = sst [smem:[#allocation49_spill]] %s4124_s3 }
   0x5   :  { %4169 = sst [smem:[#allocation50_spill]] %s4125_s4 }
   0x6   :  { %4170 = sst [smem:[#allocation51_spill]] %s4126_s5 }
   0x7   :  { %4171 = sst [smem:[#allocation52_spill]] %s4127_s6 }
   0x8   :  { %4172 = sst [smem:[#allocation53_spill]] %s4128_s7 }
   0x9   :  { %4173 = sst [smem:[#allocation54_spill]] %s4129_s8 }
   0xa   :  { %4174 = sst [smem:[#allocation55_spill]] %s4130_s9 }
   0xb   :  { %4175 = sst [smem:[#allocation56_spill]] %s4131_s10 }
   0xc   :  { %4176 = sst [smem:[#allocation57_spill]] %s4132_s11 }
   0xd   :  { %4177 = sst [smem:[#allocation58_spill]] %s4138_s17 }
   0xe   :  { %4178 = sst [smem:[#allocation59_spill]] %s4139_s18 }
   0xf   :  { %4179 = sst [smem:[#allocation60_spill]] %s4140_s19 }
  0x10   :  { %4180 = sst [smem:[#allocation61_spill]] %s4141_s20 }
  0x11   :  { %26 = vsyncpa [#allocation6], 0 }
  0x12   :  { %27 = vsyncpa [#allocation9], 0 }
  0x13   :  { %29 = vsyncpa [#allocation9 + $0x1], 0 }
  0x14   :  { %30 = vsyncpa [#allocation12], 0 }
  0x15   :  { %31 = vsyncpa [#allocation15], 0 }
  0x16   :  { %32 = vsyncpa [#allocation18], 0 }
  0x17   :  { %33 = vsyncpa [#allocation21], 0 }
  0x18   :  { %34 = vsyncpa [#allocation24], 0 }
  0x19   :  { %35 = vsyncpa [#allocation27], 0 }
  0x1a   :  { %36 = vsyncpa [#allocation7], 0 }
  0x1b   :  { %38 = vsyncpa [#allocation7 + $0x1], 0 }
  0x1c   :  { %39 = vsyncpa [#allocation31], 0 }
  0x1d   :  { %41 = vsyncpa [#allocation31 + $0x1], 0  ;;  %s3468_s1 = smov 0   ;;  %s3470_s22 = smov 0  }
  0x1e   :  { %s3472_s23 = smov 0   ;;  %s3474_s24 = smov 0  }
  0x1f LB: > { %4181 = sst [smem:[#allocation43_spill]] %s3319_s1  ;;  %s3333_s2 = smov [#allocation10]   ;;  %s3331_s24 = sphi %s3474_s24, %s4244_s24   ;;  %s3327_s23 = sphi %s3472_s23, %s4243_s23   ;;  %s3323_s22 = sphi %s3470_s22, %s4242_s22   ;;  %s3319_s1 = sphi %s3468_s1, %s4241_s1  }
  0x20   : > { %s537_s25 = sshll.u32 %s3333_s2, 4  ;;  %s3489_s3 = sadd.s32 4294967295, %s3331_s24   ;;  %s538_s25 = int_to_ptr.vmem [resolvable:$true] %s537_s25 }
  0x21   : > { %4182 = sst [smem:[#allocation44_spill]] %s3489_s3  ;;  %p2258_p0 = scmp.ge.s32.totalorder %s3331_s24, 1 }
  0x22   : > { %p4149_p1 = scmp.eq.s32.totalorder %s3489_s3, 0  ;;  %p508_p2 = scmp.lt.s32.totalorder %s3331_s24, 7 }
  0x23   : > { %s3334_s27 = smov [#allocation11]   ;;  %s3335_s29 = smov [#allocation14]  }
  0x24   : > { %p3495_p4 = pnand %p2258_p0, %p508_p2  ;;  %s547_s28 = sshll.u32 %s3334_s27, 4  ;;  %s3507_s28 = int_to_ptr.vmem [resolvable:$true] %s547_s28 }
  0x25   : > { %s571_s30 = sshll.u32 %s3335_s29, 4  ;;  %s4186_s2 = sld [smem:[#allocation49_spill]]  ;;  %s3509_s30 = int_to_ptr.vmem [resolvable:$true] %s571_s30 }
  0x26   : > { %s4183_s26 = scalar_select %p3495_p4, 1, 0 }
  0x27   : > { %p2618_p5 = pneg %p3495_p4 }
  0x28   : > { %4184 = sst [smem:[#allocation45_spill]] %s4183_s26 }
  0x29   : > { %p3503_p6 = pnand %p2618_p5, %p4149_p1 }
  0x2b   : > { %s2779_s19 = scalar_lea.hbm %s4186_s2, 32  ;;  %p3519_p8 = pneg %p3503_p6 }
  0x2c   : > { %p2780_p7 = scmp.ne.s32.totalorder %s4186_s2, %s2779_s19  ;;  %p2786_p11 = scmp.lt.u32.totalorder %s2779_s19, %s4186_s2 }
  0x2e   : > { %p2782_p9 = pnand %p3519_p8, %p2780_p7 }
  0x30   : > { %p2783_p10 = pneg %p2782_p9 }
  0x32   : > { %p2788_p12 = pnand %p2786_p11, %p2783_p10 }
  0x34   : > { %2791 = shalt.err (!%p2788_p12)
}
  0x35   : > { %s2792_s0 = scalar_lea.vmem %s538_s25, 32  ;;  %p2800_p5 = scmp.lt.s32.totalorder %s538_s25, %s538_s25 }
  0x36   : > { %p2793_p13 = scmp.ne.s32.totalorder %s538_s25, %s2792_s0  ;;  %p2801_p3 = scmp.lt.s32.totalorder %s2792_s0, %s2792_s0 }
  0x38   : > { %p2795_p0 = pnand %p2793_p13, %p3519_p8  ;;  %p2802_p1 = por %p2801_p3, %p2800_p5 }
  0x3a   : > { %p2796_p2 = pneg %p2795_p0 }
  0x3c   : > { %p2803_p4 = pnand %p2802_p1, %p2796_p2 }
  0x3e   : > { %2806 = shalt.err (!%p2803_p4)
}
  0x3f   : > { %2624 = dma.hbm_to_vmem [thread:$0]  (!%p3503_p6), %s4186_s2, 32, %s538_s25, [#allocation9]  }
  0x40   : > { %s4188_s21 = sld [smem:[#allocation50_spill]] }
  0x46   : > { %s2807_s29 = scalar_lea.hbm %s4188_s21, 512 }
  0x47   : > { %p2808_p7 = scmp.ne.s32.totalorder %s4188_s21, %s2807_s29  ;;  %p2814_p1 = scmp.lt.u32.totalorder %s2807_s29, %s4188_s21 }
  0x49   : > { %p2810_p9 = pnand %p2808_p7, %p3519_p8 }
  0x4b   : > { %p2811_p3 = pneg %p2810_p9 }
  0x4d   : > { %p2816_p4 = pnand %p2814_p1, %p2811_p3 }
  0x4f   : > { %2819 = shalt.err (!%p2816_p4)
}
  0x50   : > { %s2820_s25 = scalar_lea.vmem %s3507_s28, 512  ;;  %p2828_p13 = scmp.lt.s32.totalorder %s3507_s28, %s3507_s28 }
  0x51   : > { %p2821_p10 = scmp.ne.s32.totalorder %s3507_s28, %s2820_s25  ;;  %p2829_p0 = scmp.lt.s32.totalorder %s2820_s25, %s2820_s25 }
  0x53   : > { %p2823_p11 = pnand %p2821_p10, %p3519_p8  ;;  %p2830_p2 = por %p2829_p0, %p2828_p13 }
  0x55   : > { %p2824_p12 = pneg %p2823_p11 }
  0x57   : > { %p2831_p5 = pnand %p2830_p2, %p2824_p12 }
  0x59   : > { %2834 = shalt.err (!%p2831_p5)
}
  0x5a   : > { %s3336_s8 = smov 128   ;;  %s3337_s3 = smov 8  }
  0x5b   : > { %2627 = dma.hbm_to_vmem [thread:$0]  (!%p3503_p6), %s4188_s21, 512, %s3507_s28, [#allocation12], %s3336_s8, %s3336_s8, %s3337_s3  }
  0x5c   : > { %s4189_s6 = sld [smem:[#allocation52_spill]] }
  0x62   : > { %s2835_s19 = scalar_lea.hbm %s4189_s6, 512 }
  0x63   : > { %p2836_p7 = scmp.ne.s32.totalorder %s4189_s6, %s2835_s19  ;;  %p2842_p1 = scmp.lt.u32.totalorder %s2835_s19, %s4189_s6 }
  0x65   : > { %p2838_p9 = pnand %p2836_p7, %p3519_p8 }
  0x67   : > { %p2839_p3 = pneg %p2838_p9 }
  0x69   : > { %p2844_p4 = pnand %p2842_p1, %p2839_p3 }
  0x6b   : > { %2847 = shalt.err (!%p2844_p4)
}
  0x6c   : > { %s2848_s28 = scalar_lea.vmem %s3509_s30, 512  ;;  %p2856_p13 = scmp.lt.s32.totalorder %s3509_s30, %s3509_s30 }
  0x6d   : > { %p2849_p10 = scmp.ne.s32.totalorder %s3509_s30, %s2848_s28  ;;  %p2857_p0 = scmp.lt.s32.totalorder %s2848_s28, %s2848_s28 }
  0x6f   : > { %p2851_p11 = pnand %p2849_p10, %p3519_p8  ;;  %p2858_p2 = por %p2857_p0, %p2856_p13 }
  0x71   : > { %p2852_p12 = pneg %p2851_p11 }
  0x73   : > { %p2859_p5 = pnand %p2858_p2, %p2852_p12 }
  0x75   : > { %2862 = shalt.err (!%p2859_p5)
}
  0x76   : > { %2633 = dma.hbm_to_vmem [thread:$0]  (!%p3503_p6), %s4189_s6, 512, %s3509_s30, [#allocation15], %s3336_s8, %s3336_s8, %s3337_s3  }
  0x77   : > { %s3338_s18 = smov [#allocation17]   ;;  %s3339_s17 = smov [#allocation20]  }
  0x78   : > { %s599_s20 = sshll.u32 %s3338_s18, 4  ;;  %s623_s19 = sshll.u32 %s3339_s17, 4  ;;  %s600_s20 = int_to_ptr.vmem [resolvable:$true] %s599_s20  ;;  %s624_s19 = int_to_ptr.vmem [resolvable:$true] %s623_s19 }
  0x79   : > { %s4190_s9 = sld [smem:[#allocation55_spill]] }
  0x7f   : > { %s2863_s25 = scalar_lea.hbm %s4190_s9, 16 }
  0x80   : > { %p2864_p7 = scmp.ne.s32.totalorder %s4190_s9, %s2863_s25  ;;  %p2870_p1 = scmp.lt.u32.totalorder %s2863_s25, %s4190_s9 }
  0x82   : > { %p2866_p9 = pnand %p2864_p7, %p3519_p8 }
  0x84   : > { %p2867_p3 = pneg %p2866_p9 }
  0x86   : > { %p2872_p4 = pnand %p2870_p1, %p2867_p3 }
  0x88   : > { %2875 = shalt.err (!%p2872_p4)
}
  0x89   : > { %s2876_s30 = scalar_lea.vmem %s600_s20, 16  ;;  %s2883_s26 = scalar_lea.vmem %s600_s20, 32 }
  0x8a   : > { %p2877_p10 = scmp.ne.s32.totalorder %s600_s20, %s2876_s30  ;;  %p2884_p13 = scmp.lt.s32.totalorder %s600_s20, %s600_s20 }
  0x8b   : > { %p2885_p0 = scmp.lt.s32.totalorder %s2883_s26, %s2876_s30 }
  0x8c   : > { %p2879_p11 = pnand %p2877_p10, %p3519_p8 }
  0x8d   : > { %p2886_p2 = por %p2885_p0, %p2884_p13 }
  0x8e   : > { %p2880_p12 = pneg %p2879_p11 }
  0x90   : > { %p2887_p5 = pnand %p2886_p2, %p2880_p12 }
  0x92   : > { %2890 = shalt.err (!%p2887_p5)
}
  0x93   : > { %2639 = dma.hbm_to_vmem [thread:$0]  (!%p3503_p6), %s4190_s9, 16, %s600_s20, [#allocation18]  }
  0x94   : > { %s4191_s11 = sld [smem:[#allocation57_spill]] }
  0x9a   : > { %s2891_s29 = scalar_lea.hbm %s4191_s11, 16 }
  0x9b   : > { %p2892_p7 = scmp.ne.s32.totalorder %s4191_s11, %s2891_s29  ;;  %p2898_p1 = scmp.lt.u32.totalorder %s2891_s29, %s4191_s11 }
  0x9d   : > { %p2894_p9 = pnand %p2892_p7, %p3519_p8 }
  0x9f   : > { %p2895_p3 = pneg %p2894_p9 }
  0xa1   : > { %p2900_p4 = pnand %p2898_p1, %p2895_p3 }
  0xa3   : > { %2903 = shalt.err (!%p2900_p4)
}
  0xa4   : > { %s2904_s30 = scalar_lea.vmem %s624_s19, 16  ;;  %s2911_s20 = scalar_lea.vmem %s624_s19, 32 }
  0xa5   : > { %p2905_p10 = scmp.ne.s32.totalorder %s624_s19, %s2904_s30  ;;  %p2912_p13 = scmp.lt.s32.totalorder %s624_s19, %s624_s19 }
  0xa6   : > { %p2913_p0 = scmp.lt.s32.totalorder %s2911_s20, %s2904_s30 }
  0xa7   : > { %p2907_p11 = pnand %p2905_p10, %p3519_p8 }
  0xa8   : > { %p2914_p2 = por %p2913_p0, %p2912_p13 }
  0xa9   : > { %p2908_p12 = pneg %p2907_p11 }
  0xab   : > { %p2915_p5 = pnand %p2914_p2, %p2908_p12 }
  0xad   : > { %2918 = shalt.err (!%p2915_p5)
}
  0xae   : > { %2645 = dma.hbm_to_vmem [thread:$0]  (!%p3503_p6), %s4191_s11, 16, %s624_s19, [#allocation21]  }
  0xaf   : > { %s3340_s18 = smov [#allocation23]   ;;  %s3341_s17 = smov [#allocation26]  }
  0xb0   : > { %s644_s1 = sshll.u32 %s3340_s18, 4  ;;  %s670_s29 = sshll.u32 %s3341_s17, 4  ;;  %s645_s1 = int_to_ptr.vmem [resolvable:$true] %s644_s1  ;;  %s671_s29 = int_to_ptr.vmem [resolvable:$true] %s670_s29 }
  0xb1   : > { %s2919_s28 = scalar_lea.hbm %s4134_s13, 256 }
  0xb2   : > { %p2920_p7 = scmp.ne.s32.totalorder %s4134_s13, %s2919_s28  ;;  %p2926_p1 = scmp.lt.u32.totalorder %s2919_s28, %s4134_s13 }
  0xb4   : > { %p2922_p9 = pnand %p2920_p7, %p3519_p8 }
  0xb6   : > { %p2923_p3 = pneg %p2922_p9 }
  0xb8   : > { %p2928_p4 = pnand %p2926_p1, %p2923_p3 }
  0xba   : > { %2931 = shalt.err (!%p2928_p4)
}
  0xbb   : > { %s2932_s19 = scalar_lea.vmem %s645_s1, 256  ;;  %p2940_p13 = scmp.lt.s32.totalorder %s645_s1, %s645_s1 }
  0xbc   : > { %p2933_p10 = scmp.ne.s32.totalorder %s645_s1, %s2932_s19  ;;  %p2941_p0 = scmp.lt.s32.totalorder %s2932_s19, %s2932_s19 }
  0xbe   : > { %p2935_p11 = pnand %p2933_p10, %p3519_p8  ;;  %p2942_p2 = por %p2941_p0, %p2940_p13 }
  0xc0   : > { %p2936_p12 = pneg %p2935_p11 }
  0xc2   : > { %p2943_p5 = pnand %p2942_p2, %p2936_p12 }
  0xc4   : > { %2946 = shalt.err (!%p2943_p5)
}
  0xc5   : > { %2651 = dma.hbm_to_vmem [thread:$0]  (!%p3503_p6), %s4134_s13, 256, %s645_s1, [#allocation24], %s3336_s8, %s3336_s8, %s3337_s3  }
  0xc6   : > { %s2947_s25 = scalar_lea.hbm %s4136_s15, 512 }
  0xc7   : > { %p2948_p7 = scmp.ne.s32.totalorder %s4136_s15, %s2947_s25  ;;  %p2954_p1 = scmp.lt.u32.totalorder %s2947_s25, %s4136_s15 }
  0xc9   : > { %p2950_p9 = pnand %p2948_p7, %p3519_p8 }
  0xcb   : > { %p2951_p3 = pneg %p2950_p9 }
  0xcd   : > { %p2956_p4 = pnand %p2954_p1, %p2951_p3 }
  0xcf   : > { %2959 = shalt.err (!%p2956_p4)
}
  0xd0   : > { %s2960_s26 = scalar_lea.vmem %s671_s29, 512  ;;  %p2968_p13 = scmp.lt.s32.totalorder %s671_s29, %s671_s29 }
  0xd1   : > { %p2961_p10 = scmp.ne.s32.totalorder %s671_s29, %s2960_s26  ;;  %p2969_p0 = scmp.lt.s32.totalorder %s2960_s26, %s2960_s26 }
  0xd3   : > { %p2963_p11 = pnand %p2961_p10, %p3519_p8  ;;  %p2970_p2 = por %p2969_p0, %p2968_p13 }
  0xd5   : > { %p2964_p12 = pneg %p2963_p11 }
  0xd7   : > { %p2971_p5 = pnand %p2970_p2, %p2964_p12 }
  0xd9   : > { %2974 = shalt.err (!%p2971_p5)
}
  0xda   : > { %2657 = dma.hbm_to_vmem [thread:$0]  (!%p3503_p6), %s4136_s15, 512, %s671_s29, [#allocation27], %s3336_s8, %s3336_s8, %s3337_s3  }
  0xdb   : > { %s3342_s21 = smov [#allocation5]   ;;  %s3343_s17 = smov [#allocation13]  }
  0xdc   : > { %s520_s18 = sshll.u32 %s3342_s21, 4  ;;  %s561_s0 = sshll.u32 %s3343_s17, 4  ;;  %s521_s18 = int_to_ptr.vmem [resolvable:$true] %s520_s18  ;;  %s562_s0 = int_to_ptr.vmem [resolvable:$true] %s561_s0 }
  0xdd   : > { %s4192_s2 = sld [smem:[#allocation46_spill]] }
  0xe3   : > { %s2975_s30 = scalar_lea.hbm %s4192_s2, 512 }
  0xe4   : > { %p2976_p7 = scmp.ne.s32.totalorder %s4192_s2, %s2975_s30  ;;  %p2982_p1 = scmp.lt.u32.totalorder %s2975_s30, %s4192_s2 }
  0xe6   : > { %p2978_p9 = pnand %p2976_p7, %p3519_p8 }
  0xe8   : > { %p2979_p3 = pneg %p2978_p9 }
  0xea   : > { %p2984_p4 = pnand %p2982_p1, %p2979_p3 }
  0xec   : > { %2987 = shalt.err (!%p2984_p4)
}
  0xed   : > { %s2988_s29 = scalar_lea.vmem %s521_s18, 512  ;;  %p2996_p13 = scmp.lt.s32.totalorder %s521_s18, %s521_s18 }
  0xee   : > { %p2989_p10 = scmp.ne.s32.totalorder %s521_s18, %s2988_s29  ;;  %p2997_p0 = scmp.lt.s32.totalorder %s2988_s29, %s2988_s29 }
  0xf0   : > { %p2991_p11 = pnand %p2989_p10, %p3519_p8  ;;  %p2998_p2 = por %p2997_p0, %p2996_p13 }
  0xf2   : > { %p2992_p12 = pneg %p2991_p11 }
  0xf4   : > { %p2999_p5 = pnand %p2998_p2, %p2992_p12 }
  0xf6   : > { %3002 = shalt.err (!%p2999_p5)
}
  0xf7   : > { %2621 = dma.hbm_to_vmem [thread:$0]  (!%p3503_p6), %s4192_s2, 512, %s521_s18, [#allocation6], %s3336_s8, %s3336_s8, %s3337_s3  }
  0xf8   : > { %s4193_s5 = sld [smem:[#allocation51_spill]] }
  0xfe   : > { %s3003_s25 = scalar_lea.hbm %s4193_s5, 16 }
  0xff   : > { %p3004_p7 = scmp.ne.s32.totalorder %s4193_s5, %s3003_s25  ;;  %p3010_p1 = scmp.lt.u32.totalorder %s3003_s25, %s4193_s5 }
 0x101   : > { %p3006_p9 = pnand %p3004_p7, %p3519_p8 }
 0x103   : > { %p3007_p3 = pneg %p3006_p9 }
 0x105   : > { %p3012_p4 = pnand %p3010_p1, %p3007_p3 }
 0x107   : > { %3015 = shalt.err (!%p3012_p4)
}
 0x108   : > { %s3016_s1 = scalar_lea.vmem %s562_s0, 16  ;;  %s3023_s18 = scalar_lea.vmem %s562_s0, 32 }
 0x109   : > { %p3017_p10 = scmp.ne.s32.totalorder %s562_s0, %s3016_s1  ;;  %p3024_p13 = scmp.lt.s32.totalorder %s562_s0, %s562_s0 }
 0x10a   : > { %p3025_p0 = scmp.lt.s32.totalorder %s3023_s18, %s3016_s1 }
 0x10b   : > { %p3019_p11 = pnand %p3017_p10, %p3519_p8 }
 0x10c   : > { %p3026_p2 = por %p3025_p0, %p3024_p13 }
 0x10d   : > { %p3020_p12 = pneg %p3019_p11 }
 0x10f   : > { %p3027_p5 = pnand %p3026_p2, %p3020_p12 }
 0x111   : > { %3030 = shalt.err (!%p3027_p5)
}
 0x112   : > { %2630 = dma.hbm_to_vmem [thread:$0]  (!%p3503_p6), %s4193_s5, 16, %s562_s0, [#allocation12]  }
 0x113   : > { %s3344_s19 = smov [#allocation16]   ;;  %s3345_s17 = smov [#allocation19]  }
 0x114   : > { %s585_s21 = sshll.u32 %s3344_s19, 4  ;;  %s609_s25 = sshll.u32 %s3345_s17, 4  ;;  %s586_s21 = int_to_ptr.vmem [resolvable:$true] %s585_s21  ;;  %s610_s25 = int_to_ptr.vmem [resolvable:$true] %s609_s25 }
 0x115   : > { %s4194_s7 = sld [smem:[#allocation53_spill]] }
 0x11b   : > { %s3031_s20 = scalar_lea.hbm %s4194_s7, 16 }
 0x11c   : > { %p3032_p7 = scmp.ne.s32.totalorder %s4194_s7, %s3031_s20  ;;  %p3038_p1 = scmp.lt.u32.totalorder %s3031_s20, %s4194_s7 }
 0x11e   : > { %p3034_p9 = pnand %p3032_p7, %p3519_p8 }
 0x120   : > { %p3035_p3 = pneg %p3034_p9 }
 0x122   : > { %p3040_p4 = pnand %p3038_p1, %p3035_p3 }
 0x124   : > { %3043 = shalt.err (!%p3040_p4)
}
 0x125   : > { %s3044_s0 = scalar_lea.vmem %s586_s21, 16  ;;  %s3051_s6 = scalar_lea.vmem %s586_s21, 32 }
 0x126   : > { %p3045_p10 = scmp.ne.s32.totalorder %s586_s21, %s3044_s0  ;;  %p3052_p13 = scmp.lt.s32.totalorder %s586_s21, %s586_s21 }
 0x127   : > { %p3053_p0 = scmp.lt.s32.totalorder %s3051_s6, %s3044_s0 }
 0x128   : > { %p3047_p11 = pnand %p3045_p10, %p3519_p8 }
 0x129   : > { %p3054_p2 = por %p3053_p0, %p3052_p13 }
 0x12a   : > { %p3048_p12 = pneg %p3047_p11 }
 0x12c   : > { %p3055_p5 = pnand %p3054_p2, %p3048_p12 }
 0x12e   : > { %3058 = shalt.err (!%p3055_p5)
}
 0x12f   : > { %2636 = dma.hbm_to_vmem [thread:$0]  (!%p3503_p6), %s4194_s7, 16, %s586_s21, [#allocation15]  }
 0x130   : > { %s4195_s10 = sld [smem:[#allocation56_spill]] }
 0x136   : > { %s3059_s20 = scalar_lea.hbm %s4195_s10, 512 }
 0x137   : > { %p3060_p7 = scmp.ne.s32.totalorder %s4195_s10, %s3059_s20  ;;  %p3066_p1 = scmp.lt.u32.totalorder %s3059_s20, %s4195_s10 }
 0x139   : > { %p3062_p9 = pnand %p3060_p7, %p3519_p8 }
 0x13b   : > { %p3063_p3 = pneg %p3062_p9 }
 0x13d   : > { %p3068_p4 = pnand %p3066_p1, %p3063_p3 }
 0x13f   : > { %3071 = shalt.err (!%p3068_p4)
}
 0x140   : > { %s3072_s0 = scalar_lea.vmem %s610_s25, 512  ;;  %p3080_p13 = scmp.lt.s32.totalorder %s610_s25, %s610_s25 }
 0x141   : > { %p3073_p10 = scmp.ne.s32.totalorder %s610_s25, %s3072_s0  ;;  %p3081_p0 = scmp.lt.s32.totalorder %s3072_s0, %s3072_s0 }
 0x143   : > { %p3075_p11 = pnand %p3073_p10, %p3519_p8  ;;  %p3082_p2 = por %p3081_p0, %p3080_p13 }
 0x145   : > { %p3076_p12 = pneg %p3075_p11 }
 0x147   : > { %p3083_p5 = pnand %p3082_p2, %p3076_p12 }
 0x149   : > { %3086 = shalt.err (!%p3083_p5)
}
 0x14a   : > { %2642 = dma.hbm_to_vmem [thread:$0]  (!%p3503_p6), %s4195_s10, 512, %s610_s25, [#allocation18], %s3336_s8, %s3336_s8, %s3337_s3  }
 0x14b   : > { %s3346_s19 = smov [#allocation22]   ;;  %s3347_s28 = smov [#allocation25]  }
 0x14c   : > { %s634_s17 = sshll.u32 %s3346_s19, 4  ;;  %s657_s30 = sshll.u32 %s3347_s28, 4  ;;  %s635_s17 = int_to_ptr.vmem [resolvable:$true] %s634_s17  ;;  %s658_s30 = int_to_ptr.vmem [resolvable:$true] %s657_s30 }
 0x14d   : > { %s3087_s1 = scalar_lea.hbm %s4133_s12, 16 }
 0x14e   : > { %p3088_p7 = scmp.ne.s32.totalorder %s4133_s12, %s3087_s1  ;;  %p3094_p1 = scmp.lt.u32.totalorder %s3087_s1, %s4133_s12 }
 0x150   : > { %p3090_p9 = pnand %p3088_p7, %p3519_p8 }
 0x152   : > { %p3091_p3 = pneg %p3090_p9 }
 0x154   : > { %p3096_p4 = pnand %p3094_p1, %p3091_p3 }
 0x156   : > { %3099 = shalt.err (!%p3096_p4)
}
 0x157   : > { %s3100_s25 = scalar_lea.vmem %s635_s17, 16  ;;  %s3107_s6 = scalar_lea.vmem %s635_s17, 32 }
 0x158   : > { %p3101_p10 = scmp.ne.s32.totalorder %s635_s17, %s3100_s25  ;;  %p3108_p13 = scmp.lt.s32.totalorder %s635_s17, %s635_s17 }
 0x159   : > { %p3109_p0 = scmp.lt.s32.totalorder %s3107_s6, %s3100_s25 }
 0x15a   : > { %p3103_p11 = pnand %p3101_p10, %p3519_p8 }
 0x15b   : > { %p3110_p2 = por %p3109_p0, %p3108_p13 }
 0x15c   : > { %p3104_p12 = pneg %p3103_p11 }
 0x15e   : > { %p3111_p5 = pnand %p3110_p2, %p3104_p12 }
 0x160   : > { %3114 = shalt.err (!%p3111_p5)
}
 0x161   : > { %2648 = dma.hbm_to_vmem [thread:$0]  (!%p3503_p6), %s4133_s12, 16, %s635_s17, [#allocation21]  }
 0x162   : > { %s3115_s1 = scalar_lea.hbm %s4135_s14, 512 }
 0x163   : > { %p3116_p7 = scmp.ne.s32.totalorder %s4135_s14, %s3115_s1  ;;  %p3122_p1 = scmp.lt.u32.totalorder %s3115_s1, %s4135_s14 }
 0x165   : > { %p3118_p9 = pnand %p3116_p7, %p3519_p8 }
 0x167   : > { %p3119_p3 = pneg %p3118_p9 }
 0x169   : > { %p3124_p4 = pnand %p3122_p1, %p3119_p3 }
 0x16b   : > { %3127 = shalt.err (!%p3124_p4)
}
 0x16c   : > { %s3128_s25 = scalar_lea.vmem %s658_s30, 512  ;;  %p3136_p13 = scmp.lt.s32.totalorder %s658_s30, %s658_s30 }
 0x16d   : > { %p3129_p10 = scmp.ne.s32.totalorder %s658_s30, %s3128_s25  ;;  %p3137_p0 = scmp.lt.s32.totalorder %s3128_s25, %s3128_s25 }
 0x16f   : > { %p3131_p11 = pnand %p3129_p10, %p3519_p8  ;;  %p3138_p2 = por %p3137_p0, %p3136_p13 }
 0x171   : > { %p3132_p12 = pneg %p3131_p11 }
 0x173   : > { %p3139_p5 = pnand %p3138_p2, %p3132_p12 }
 0x175   : > { %3142 = shalt.err (!%p3139_p5)
}
 0x176   : > { %2654 = dma.hbm_to_vmem [thread:$0]  (!%p3503_p6), %s4135_s14, 512, %s658_s30, [#allocation24], %s3336_s8, %s3336_s8, %s3337_s3  }
 0x177   : > { %s3348_s19 = smov [#allocation28]   ;;  %s3143_s1 = scalar_lea.hbm %s4137_s16, 16 }
 0x178   : > { %s684_s28 = sshll.u32 %s3348_s19, 4  ;;  %p3144_p7 = scmp.ne.s32.totalorder %s4137_s16, %s3143_s1  ;;  %s685_s28 = int_to_ptr.vmem [resolvable:$true] %s684_s28 }
 0x179   : > { %p3150_p1 = scmp.lt.u32.totalorder %s3143_s1, %s4137_s16 }
 0x17a   : > { %p3146_p9 = pnand %p3144_p7, %p3519_p8 }
 0x17c   : > { %p3147_p3 = pneg %p3146_p9 }
 0x17e   : > { %p3152_p4 = pnand %p3150_p1, %p3147_p3 }
 0x180   : > { %3155 = shalt.err (!%p3152_p4)
}
 0x181   : > { %s3156_s8 = scalar_lea.vmem %s685_s28, 16  ;;  %s3163_s3 = scalar_lea.vmem %s685_s28, 32 }
 0x182   : > { %p3157_p10 = scmp.ne.s32.totalorder %s685_s28, %s3156_s8  ;;  %p3164_p13 = scmp.lt.s32.totalorder %s685_s28, %s685_s28 }
 0x183   : > { %p3165_p0 = scmp.lt.s32.totalorder %s3163_s3, %s3156_s8 }
 0x184   : > { %p3159_p11 = pnand %p3157_p10, %p3519_p8 }
 0x185   : > { %p3166_p2 = por %p3165_p0, %p3164_p13 }
 0x186   : > { %p3160_p12 = pneg %p3159_p11 }
 0x188   : > { %p3167_p5 = pnand %p3166_p2, %p3160_p12 }
 0x18a   : > { %3170 = shalt.err (!%p3167_p5)
}
 0x18b   : > { %s4196_s27 = sld [smem:[#allocation43_spill]]  ;;  %s4197_s17 = sld [smem:[#allocation44_spill]] }
 0x18c   : > { %2660 = dma.hbm_to_vmem [thread:$0]  (!%p3503_p6), %s4137_s16, 16, %s685_s28, [#allocation27]  }
 0x18d   : > { %s2257_s6 = sadd.s32 4294967294, %s3331_s24   ;;  %s3802_s4 = sadd.s32 1, %s3331_s24  }
 0x18e   : > { %s72_s19 = ssub.s32 %s3331_s24, %s3802_s4  ;;  %s75_s20 = sadd.s32 1, %s3327_s23 }
 0x18f   : > { %p73_p8 = scmp.eq.s32.totalorder %s72_s19, 0  ;;  %p82_p7 = scmp.ne.s32.totalorder %s3327_s23, %s3323_s22 }
 0x190   : > { %p83_p9 = scmp.eq.s32.totalorder %s3331_s24, 0  ;;  %p475_p11 = scmp.eq.s32.totalorder %s2257_s6, 5 }
 0x191   : > { %p88_p3 = scmp.ne.s32.totalorder %s3323_s22, %s4196_s27  ;;  %p4199_p4 = scmp.eq.s32.totalorder %s4197_s17, 0 }
 0x192   : > { %s3813_s26 = scalar_select %p73_p8, %s3327_s23, %s75_s20  }
 0x193   : > { %p3815_p1 = por %p83_p9, %p82_p7  ;;  %p3821_p6 = por %p4199_p4, %p88_p3 }
 0x194   : > { %p469_p10 = scmp.eq.s32.totalorder %s4197_s17, 5  ;;  %p2686_p12 = scmp.lt.s32.totalorder %s3331_s24, 6 }
 0x195   : > { %s701_s18 = sand.u32 1, %s3331_s24   ;;  %p3832_p0 = por %p475_p11, %p88_p3 }
 0x196   : > { %p3828_p13 = por %p469_p10, %p82_p7  ;;  %s703_s21 = sand.u32 1, %s3327_s23  }
 0x197   : > { %s4202_s0 = scalar_select %p3832_p0, 1, 0 }
 0x198   : > { %s4201_s29 = scalar_select %p3828_p13, 1, 0 }
 0x199   : > { %s2274_s8 = sshll.u32 %s703_s21, 1  ;;  %s2275_s3 = sshll.u32 %s3331_s24, 5 }
 0x19a   : > { %s4203_s27 = sld [smem:[#allocation47_spill]]  ;;  %s705_s17 = scalar_lea.vmem [#allocation8], %s2274_s8 }
 0x19b   : > { %s712_s6 = sshll.u32 %s705_s17, 4  ;;  %p3845_p2 = pnand %p2686_p12, %p3815_p1  ;;  %s3849_s6 = int_to_ptr.vmem [resolvable:$true] %s712_s6 }
 0x19c   : > { %s702_s21 = scalar_lea.sflag [#allocation9], %s701_s18 }
 0x19d   : > { %p3173_p8 = pneg %p3845_p2 }
 0x1a0   : > { %s3841_s19 = scalar_lea.hbm %s4203_s27, %s2275_s3  ;;  %s3176_s1 = scalar_lea.hbm %s4203_s27, 192 }
 0x1a1   : > { %s3171_s2 = scalar_lea.hbm %s3841_s19, 32  ;;  %p3177_p3 = scmp.lt.u32.totalorder %s3841_s19, %s4203_s27 }
 0x1a2   : > { %p3172_p5 = scmp.ne.s32.totalorder %s3841_s19, %s3171_s2  ;;  %p3178_p1 = scmp.lt.u32.totalorder %s3176_s1, %s3171_s2 }
 0x1a3   : > { %p3180_p10 = scmp.lt.u32.totalorder %s3171_s2, %s3841_s19 }
 0x1a4   : > { %p3174_p7 = pnand %p3173_p8, %p3172_p5  ;;  %p3179_p4 = por %p3178_p1, %p3177_p3 }
 0x1a6   : > { %p3175_p9 = pneg %p3174_p7  ;;  %p3181_p11 = por %p3180_p10, %p3179_p4 }
 0x1a8   : > { %p3182_p12 = pnand %p3181_p11, %p3175_p9 }
 0x1aa   : > { %3185 = shalt.err (!%p3182_p12)
}
 0x1ab   : > { %s3186_s18 = scalar_lea.vmem %s3849_s6, 32  ;;  %s3349_s17 = smov [#allocation8]  }
 0x1ac   : > { %p3187_p5 = scmp.ne.s32.totalorder %s3849_s6, %s3186_s18  ;;  %s3191_s8 = sshll.u32 %s3349_s17, 4  ;;  %s3192_s8 = int_to_ptr.vmem [resolvable:$false] %s3191_s8 }
 0x1ad   : > { %s3193_s3 = scalar_lea.vmem %s3192_s8, 64  ;;  %p3194_p13 = scmp.lt.s32.totalorder %s3849_s6, %s3192_s8 }
 0x1ae   : > { %p3189_p7 = pnand %p3187_p5, %p3173_p8  ;;  %p3195_p3 = scmp.lt.s32.totalorder %s3193_s3, %s3186_s18 }
 0x1b0   : > { %p3190_p0 = pneg %p3189_p7  ;;  %p3196_p1 = por %p3195_p3, %p3194_p13 }
 0x1b2   : > { %p3197_p4 = pnand %p3196_p1, %p3190_p0 }
 0x1b4   : > { %3200 = shalt.err (!%p3197_p4)
}
 0x1b5   : > { %2664 = dma.hbm_to_vmem [thread:$0]  (!%p3845_p2), %s3841_s19, 32, %s3849_s6, %s702_s21  }
 0x1b6   : > { %s4205_s2 = sld [smem:[#allocation45_spill]] }
 0x1bc   : > { %p4206_p9 = scmp.ne.s32.totalorder %s4205_s2, 0 }
 0x1bd   : > { %s4207_s1 = sld [smem:[#allocation44_spill]] (!%p4206_p9) }
 0x1be   : > { %721 = sbr.rel (%p4206_p9) target bundleno = 2640 (0xa50), region = 96 }
 0x1c3   : > { %p4208_p8 = scmp.eq.s32.totalorder (!%p4206_p9), %s4207_s1, 0 }
 0x1c5   : > { %3274 = dma.done.wait (%p4208_p8), [#allocation6], 512   ;;  %p4209_p10 = pmov %p4208_p8 }
 0x1c6   : > { %s727_s30 = sand.u32 1, %s4207_s1   ;;  %s3884_s25 = sand.u32 1, %s3323_s22  }
 0x1c7   : > { %3276 = vsyncadd (%p4209_p10), [#allocation6], 4294966784  ;;  %s3887_s20 = sshll.u32 %s3884_s25, 1  ;;  %s728_s19 = scalar_lea.sflag [#allocation9], %s727_s30 }
 0x1c8   : > { %s731_s6 = scalar_lea.vmem [#allocation8], %s3887_s20 }
 0x1c9   : > { %3278 = dma.done.wait (%p3821_p6), %s728_s19, 32  }
 0x1ca   : > { %3280 = vsyncadd (%p3821_p6), %s728_s19, 4294967264  ;;  %p4210_p13 = pmov %p4208_p8 }
 0x1cb   : > { %p4211_p0 = pmov %p4208_p8 }
 0x1cc   : > { %3282 = dma.done.wait (%p4210_p13), [#allocation9], 32  }
 0x1cd   : > { %3284 = vsyncadd (%p4211_p0), [#allocation9], 4294967264  ;;  %p4212_p2 = pmov %p4211_p0 }
 0x1ce   : > { %p4213_p11 = pmov %p4211_p0 }
 0x1cf   : > { %3286 = dma.done.wait (%p4212_p2), [#allocation12], 528  }
 0x1d0   : > { %3288 = vsyncadd (%p4213_p11), [#allocation12], 4294966768  ;;  %p4214_p12 = pmov %p4211_p0 }
 0x1d1   : > { %p4215_p5 = pmov %p4211_p0 }
 0x1d2   : > { %3290 = dma.done.wait (%p4214_p12), [#allocation15], 528  }
 0x1d3   : > { %3292 = vsyncadd (%p4215_p5), [#allocation15], 4294966768  ;;  %p4216_p6 = pmov %p4211_p0 }
 0x1d4   : > { %p4217_p7 = pmov %p4211_p0 }
 0x1d5   : > { %3294 = dma.done.wait (%p4216_p6), [#allocation18], 528  }
 0x1d6   : > { %3296 = vsyncadd (%p4217_p7), [#allocation18], 4294966768  ;;  %p4218_p3 = pmov %p4211_p0 }
 0x1d7   : > { %p4219_p1 = pmov %p4211_p0 }
 0x1d8   : > { %3298 = dma.done.wait (%p4218_p3), [#allocation21], 32  }
 0x1d9   : > { %3300 = vsyncadd (%p4219_p1), [#allocation21], 4294967264  ;;  %p4220_p4 = pmov %p4211_p0 }
 0x1da   : > { %p4221_p9 = pmov %p4211_p0 }
 0x1db   : > { %3302 = dma.done.wait (%p4220_p4), [#allocation24], 768  }
 0x1dc   : > { %3304 = vsyncadd (%p4221_p9), [#allocation24], 4294966528  ;;  %p4222_p8 = pmov %p4211_p0 }
 0x1dd   : > { %p4223_p10 = pmov %p4211_p0 }
 0x1de   : > { %3306 = dma.done.wait (%p4222_p8), [#allocation27], 528  }
 0x1df   : > { %3308 = vsyncadd (%p4223_p10), [#allocation27], 4294966768  ;;  %p4224_p13 = scmp.ne.s32.totalorder %s4207_s1, 0 }
 0x1e0   : > { %v850_v0 = vld [vmem:[#allocation11] sm:$0xff] (!%p4224_p13)  ;;  %v851_v1 = vld [vmem:[#allocation11 + $0x8] sm:$0xff] (!%p4224_p13)  ;;  %s4225_s8 = sld [smem:[#allocation54_spill]] (!%p4224_p13)  ;;  %v3350_v3 = vmov (!%p4224_p13), 0.0|0.0   ;;  %v852_v6 = vld [vmem:[#allocation11 + $0x10] sm:$0xff] (!%p4224_p13)  ;;  %vm3351_vm0 = vmmov (!%p4224_p13), 0  }
 0x1e1   : > { %848 = sbr.rel (%p4224_p13) target bundleno = 717 (0x2cd), region = 160  ;;  %2495 = vmatprep.subr.bf16.mxu1 (!%p4224_p13), %v3350_v3  ;;  %v2496_v4 = vpack.c.bf16 (!%p4224_p13), %v851_v1, %v850_v0  ;;  %v853_v7 = vld [vmem:[#allocation11 + $0x18] sm:$0xff] (!%p4224_p13)  ;;  %v3352_v8 = vmov (!%p4224_p13), 0.0   ;;  %vm861_vm1 = vcmask (!%p4224_p13), 261120   ;;  %v937_v15 = vld [vmem:[#allocation14] sm:$0xff] (!%p4224_p13)  ;;  %v938_v16 = vld [vmem:[#allocation14 + $0x8] sm:$0xff] (!%p4224_p13) }
 0x1e2   : > { %2388 = vmatprep.mubr.msk.f32.mxu1 (!%p4224_p13), %vm3351_vm0, %v3352_v8  ;;  %v2499_v12 = vpack.c.bf16 (!%p4224_p13), %v853_v7, %v852_v6  ;;  %v1019_v14 = vld [vmem:[#allocation5] sm:$0xff] (!%p4224_p13)  ;;  %v2502_v18 = vpack.c.bf16 (!%p4224_p13), %v938_v16, %v937_v15  ;;  %v939_v19 = vld [vmem:[#allocation14 + $0x10] sm:$0xff] (!%p4224_p13)  ;;  %v1020_v21 = vld [vmem:[#allocation5 + $0x8] sm:$0xff] (!%p4224_p13)  ;;  %vm935_vm2 = vcmask (!%p4224_p13), 254976  }
 0x1e3   : > { %2497 = vmatpush3.bf16.msra.mxu1 (!%p4224_p13), %v2496_v4  ;;  %2410 = vmatprep.mubr.msk.f32.mxu0 (!%p4224_p13), %vm861_vm1, %v1019_v14  ;;  %v849_v17 = vld [vmem:[#allocation10] sm:$0x3] (!%p4224_p13)  ;;  %v1021_v22 = vld [vmem:[#allocation5 + $0x10] sm:$0xff] (!%p4224_p13)  ;;  %v1022_v24 = vld [vmem:[#allocation5 + $0x18] sm:$0xff] (!%p4224_p13) }
 0x1e4   : > { %2498 = vmatprep.subr.bf16.mxu1 (!%p4224_p13), %v3350_v3  ;;  %v940_v20 = vld [vmem:[#allocation14 + $0x18] sm:$0xff] (!%p4224_p13)  ;;  %v2303_v27 = vld [vmem:[#allocation17] ss:$0 sm:$0xff] (!%p4224_p13)  ;;  %v2297_v35 = vld [vmem:[#allocation16] ss:$0 sm:$0xff] (!%p4224_p13) }
 0x1e5   : > { %v2505_v23 = vpack.c.bf16 (!%p4224_p13), %v940_v20, %v939_v19  ;;  %v2295_v25 = vld [vmem:[#allocation13] ss:$0 sm:$0xff] (!%p4224_p13) }
 0x1e6   : > { %v1023_v2 = vld [vmem:[%s4225_s8] sm:$0xff] (!%p4224_p13)  ;;  %v1024_v5 = vld [vmem:[%s4225_s8 + $0x8] sm:$0xff] (!%p4224_p13)  ;;  %v1025_v10 = vld [vmem:[%s4225_s8 + $0x10] sm:$0xff] (!%p4224_p13) }
 0x1e7   : > { %v2507_v9 = vpack.c.bf16 (!%p4224_p13), %v1024_v5, %v1023_v2  ;;  %v1026_v11 = vld [vmem:[%s4225_s8 + $0x18] sm:$0xff] (!%p4224_p13)  ;;  %2500 = vmatpush3.bf16.msra.mxu1 (!%p4224_p13), %v2499_v12 }
 0x1e8   : > { %v2511_v13 = vpack.c.bf16 %v1026_v11, %v1025_v10  ;;  %2501 = vmatprep.subr.bf16.mxu1 %v3350_v3 }
 0x1e9   : > { %2508 = vmatprep.subr.bf16.mxu0 %v2507_v9 }
 0x1ea   : > { %2510 = vmatpush3.bf16.msra.mxu0 %v2507_v9  ;;  %2389 = vmatmul.mubr.msk.f32.vlgmr.msra.gmra.mrb[0].mxu1 %vm861_vm1, %v849_v17 }
 0x1eb   : > { %2512 = vmatprep.subr.bf16.mxu0 %v2511_v13  ;;  %2503 = vmatpush3.bf16.msra.mxu1 %v2502_v18 }
 0x1ec   : > { %2399 = vmatprep.mubr.msk.f32.mxu1 %vm3351_vm0, %v3352_v8  ;;  %2504 = vmatprep.subr.bf16.mxu1 %v3350_v3 }
 0x1ee   : > { %2514 = vmatpush3.bf16.msra.mxu0 %v2511_v13 }
 0x1ef   : > { %2506 = vmatpush3.bf16.msra.mxu1 %v2505_v23 }
 0x1f1   : > { %2411 = vmatmul.mubr.msk.f32.vlgmr.msra.gmra.mrb[0].mxu0 %vm861_vm1, %v1020_v21 }
 0x1f2   : > { %2413 = vmatprep.mubr.msk.f32.mxu0 %vm861_vm1, %v1021_v22  ;;  %2400 = vmatmul.mubr.msk.f32.vlgmr.msra.gmra.mrb[2].mxu1 %vm861_vm1, %v849_v17 }
 0x1f5   : > { %2414 = vmatmul.mubr.msk.f32.gmra.mrb[2].mxu0 %vm861_vm1, %v1022_v24 }
 0x2bd   : > { %v931_v26 = vpop.f32.mrb[0].mxu1 }
 0x2be   : > { %v932_v28 = vadd.f32 %v2295_v25, %v931_v26  ;;  %v2390_v29 = vpop.f32.mrb[1].mxu1 }
 0x2c0   : > { %936 = vst.msk [vmem:[#allocation2] sm:$0x3] %vm935_vm2, %v932_v28 }
 0x2c4   : > { %v2412_v30 = vpop.f32.mrb[0].mxu0 }
 0x2c5   : > { %v1132_v31 = vadd.f32 %v2412_v30, %v2303_v27  ;;  %v1105_v32 = vpop.f32.mrb[1].mxu0  ;;  %v1014_v39 = vpop.f32.mrb[2].mxu1 }
 0x2c6   : > { %v1131_v33 = vadd.f32 %v2303_v27, %v1105_v32  ;;  %v1015_v40 = vadd.f32 %v2297_v35, %v1014_v39  ;;  %v2401_v41 = vpop.f32.mrb[3].mxu1 }
 0x2c7   : > { %1136 = vst.msk [vmem:[#allocation4 + $0x8] sm:$0xff] %vm861_vm1, %v1132_v31 }
 0x2c8   : > { %1135 = vst.msk [vmem:[#allocation4] sm:$0xff] %vm861_vm1, %v1131_v33  ;;  %v2415_v34 = vpop.f32.mrb[2].mxu0 }
 0x2c9   : > { %v1134_v36 = vadd.f32 %v2415_v34, %v2303_v27  ;;  %v1115_v37 = vpop.f32.mrb[3].mxu0  ;;  %1018 = vst.msk [vmem:[#allocation3] sm:$0x3] %vm935_vm2, %v1015_v40 }
 0x2ca   : > { %v1133_v38 = vadd.f32 %v2303_v27, %v1115_v37 }
 0x2cb   : > { %1138 = vst.msk [vmem:[#allocation4 + $0x18] sm:$0xff] %vm861_vm1, %v1134_v36 }
 0x2cc   : > { %1137 = vst.msk [vmem:[#allocation4 + $0x10] sm:$0xff] %vm861_vm1, %v1133_v38 }
 0x2cd PF: > { %v1145_v42 = vld [vmem:[#allocation19] sm:$0xff]  ;;  %v1146_v43 = vld [vmem:[#allocation19 + $0x8] sm:$0xff]  ;;  %v1147_v44 = vld [vmem:[#allocation19 + $0x10] sm:$0xff]  ;;  %v3353_v45 = vmov 0.0|0.0   ;;  %vm3354_vm3 = vmmov 0   ;;  %v3355_v48 = vmov 0.0   ;;  %v1238_v53 = vlaneseq }
 0x2ce   : > { %2515 = vmatprep.subr.bf16.mxu0 %v3353_v45  ;;  %v2516_v46 = vpack.c.bf16 %v1146_v43, %v1145_v42  ;;  %v1148_v47 = vld [vmem:[#allocation19 + $0x18] sm:$0xff]  ;;  %2424 = vmatprep.mubr.msk.f32.mxu0 %vm3354_vm3, %v3355_v48  ;;  %v3959_v50 = vld [vmem:[#allocation2] sm:$0x3]  ;;  %vm1156_vm4 = vcmask 261120   ;;  %v3356_v51 = vmov 1966171168  }
 0x2cf   : > { %2521 = vmatprep.subr.bf16.mxu1 %v3353_v45  ;;  %2431 = vmatprep.mubr.msk.f32.mxu1 %vm3354_vm3, %v3355_v48  ;;  %v2519_v49 = vpack.c.bf16 %v1148_v47, %v1147_v44  ;;  %v1236_v52 = vunpack.c.l.s4 %v3356_v51  ;;  %v1239_v55 = vshrl.u32 %v1238_v53, 7  ;;  %v2304_v56 = vld [vmem:[#allocation20] ss:$0 sm:$0xff]  ;;  %v1230_v1 = vld [vmem:[#allocation4] sm:$0xff]  ;;  %vm2523_vm5 = vmpackc.low %vm1156_vm4, %vm1156_vm4  ;;  %vm1431_vm6 = vcmask 122880   ;;  %s3358_s17 = smov 64  }
 0x2d0   : > { %2517 = vmatpush3.bf16.msra.mxu0 %v2516_v46  ;;  %v1231_v2 = vld [vmem:[#allocation4 + $0x8] sm:$0xff]  ;;  %v1139_v35 = vld [vmem:[#allocation5] sm:$0xff]  ;;  %v1141_v40 = vld [vmem:[#allocation5 + $0x10] sm:$0xff]  ;;  %vm1454_vm7 = vcmask 130048   ;;  %vm1611_vm8 = vcmask 1041409   ;;  %s4226_s3 = sld [smem:[#allocation44_spill]] }
 0x2d1   : > { %2518 = vmatprep.subr.bf16.mxu0 %v3353_v45  ;;  %v1237_v54 = vunpack.c.0.s8 %v1236_v52  ;;  %v1259_v62 = vsub.s32 0, %v1239_v55  ;;  %v1275_v18 = vld [vmem:[#allocation22] sm:$0x1]  ;;  %v1142_v41 = vld [vmem:[#allocation5 + $0x18] sm:$0xff]  ;;  %v1602_v46 = vld [vmem:[#allocation23] sm:$0xff]  ;;  %s4227_s30 = sld [smem:[#allocation48_spill]] }
 0x2d2   : > { %v1233_v6 = vld [vmem:[#allocation4 + $0x18] sm:$0xff]  ;;  %v1140_v36 = vld [vmem:[#allocation5 + $0x8] sm:$0xff]  ;;  %v2533_v43 = vpack.c.bf16 %v1142_v41, %v1141_v40  ;;  %s4228_s28 = sld [smem:[#allocation58_spill]]  ;;  %s3360_s21 = smov 96   ;;  %vm1986_vm10 = vcmask 123904   ;;  %vm1971_vm12 = vcmask 254976  }
 0x2d3   : > { %v1240_v57 = vsub.s32 %v1237_v54, %v1239_v55  ;;  %v1232_v5 = vld [vmem:[#allocation4 + $0x10] sm:$0xff]  ;;  %v2530_v37 = vpack.c.bf16 %v1140_v36, %v1139_v35  ;;  %v1603_v47 = vld [vmem:[#allocation23 + $0x8] sm:$0xff]  ;;  %v1604_v55 = vld [vmem:[#allocation25] sm:$0xff]  ;;  %s4230_s5 = scalar_lea.vmem [#allocation30], %s3887_s20  ;;  %s4231_s19 = sld [smem:[#allocation61_spill]] }
 0x2d4   : > { %2520 = vmatpush3.bf16.msra.mxu0 %v2519_v49  ;;  %v2542_v51 = vpack.c.bf16 %v1603_v47, %v1602_v46  ;;  %s4232_s2 = smov %s4230_s5  ;;  %p4233_p2 = scmp.ne.s32.totalorder %s4201_s29, 0 }
 0x2d5   : > { %2525 = vmatprep.subr.bf16.mxu0 %v3353_v45  ;;  %s2020_s1 = sshll.u32 %s4232_s2, 4  ;;  %s2021_s1 = int_to_ptr.vmem [resolvable:$true] %s2020_s1 }
 0x2d6   : > { %s4164_s7 = sshll.u32 %s4226_s3, 5 }
 0x2d7   : > { %2425 = vmatmul.mubr.msk.f32.vlgmr.msra.gmra.mrb[0].mxu0 %vm1156_vm4, %v3959_v50 }
 0x2d8   : > { %2438 = vmatprep.mubr.msk.f32.mxu0 %vm3354_vm3, %v3355_v48  ;;  %v1869_v36 = vld [vmem:[%s4228_s28] sm:$0xff]  ;;  %v1872_v40 = vld [vmem:[%s4228_s28 + $0x18] sm:$0xff] }
 0x2d9   : > { %s4042_s18 = scalar_lea.hbm %s4231_s19, %s4164_s7 }
 0x3aa   : > { %v1226_v58 = vpop.f32.mrb[0].mxu0 }
 0x3ab   : > { %v1227_v59 = vadd.f32 %v2304_v56, %v1226_v58  ;;  %v2426_v60 = vpop.f32.mrb[1].mxu0  ;;  %v1605_v56 = vld [vmem:[#allocation25 + $0x8] sm:$0xff]  ;;  %v1758_v58 = vld [vmem:[#allocation26] sm:$0xff] }
 0x3ad   : > { %v1241_v61 = vrot.slane %v1227_v59, %v1240_v57  ;;  %v1759_v59 = vld [vmem:[#allocation26 + $0x8] sm:$0xff] }
 0x3ae   : > { %v2545_v60 = vpack.c.bf16 %v1759_v59, %v1758_v58 }
 0x3af   : > { %v1242_v63 = vcombine.high %v1241_v61, %v1241_v61  ;;  %v1249_v0 = vrot.slane %v1241_v61, %v1240_v57  ;;  %v1601_v61 = vld [vmem:[%s731_s6] sm:$0x3]  ;;  %s4161_s6 = smov 32  }
 0x3b1   : > { %v1256_v3 = vrot.slane %v1242_v63, %v1240_v57  ;;  %v1260_v4 = vrot.slane %v1249_v0, %v1259_v62  ;;  %v2536_v57 = vpack.c.bf16 %v1605_v56, %v1604_v55  ;;  %v1607_v63 = vld [vmem:[#allocation25 + $0x18] sm:$0xff] }
 0x3b3   : > { %v1264_v7 = vrot.slane %v1256_v3, %v1259_v62  ;;  %v1267_v8 = vadd.f32 %v1260_v4, %v1230_v1  ;;  %v1268_v9 = vadd.f32 %v1260_v4, %v1231_v2  ;;  %v1606_v62 = vld [vmem:[#allocation25 + $0x10] sm:$0xff]  ;;  %v1761_v2 = vld [vmem:[#allocation26 + $0x18] sm:$0xff] }
 0x3b4   : > { %v2539_v0 = vpack.c.bf16 %v1607_v63, %v1606_v62  ;;  %v1760_v1 = vld [vmem:[#allocation26 + $0x10] sm:$0xff]  ;;  %v1144_v4 = vld [vmem:[#allocation3] sm:$0x3] }
 0x3b5   : > { %v1269_v10 = vadd.f32 %v1264_v7, %v1232_v5  ;;  %v1270_v11 = vadd.f32 %v1264_v7, %v1233_v6  ;;  %v1271_v12 = vmax.f32 %v1267_v8, 0.0  ;;  %v1272_v13 = vmax.f32 %v1268_v9, 0.0 }
 0x3b6   : > { %v2548_v3 = vpack.c.bf16 %v1761_v2, %v1760_v1 }
 0x3b7   : > { %v1273_v14 = vmax.f32 %v1269_v10, 0.0  ;;  %v1274_v15 = vmax.f32 %v1270_v11, 0.0  ;;  %v2522_v16 = vpack.c.bf16 %v1272_v13, %v1271_v12 }
 0x3b9   : > { %2524 = vmatpush3.bf16.xpose.msk.msra.mxu1 %vm2523_vm5, %v2522_v16  ;;  %v2526_v17 = vpack.c.bf16 %v1274_v15, %v1273_v14 }
 0x3ba   : > { %2529 = vmatprep.subr.bf16.mxu1 %v3353_v45 }
 0x3bb   : > { %2528 = vmatpush3.bf16.xpose.msk.msra.mxu0 %vm2523_vm5, %v2526_v17 }
 0x3bc   : > { %2535 = vmatprep.subr.bf16.mxu0 %v3353_v45 }
 0x3c0   : > { %2432 = vmatmul.mubr.msk.f32.vlgmr.msra.gmra.mrb[0].mxu1 %vm1156_vm4, %v1275_v18 }
 0x3c1   : > { %2445 = vmatprep.mubr.msk.f32.mxu1 %vm3354_vm3, %v3355_v48  ;;  %2531 = vmatpush3.bf16.msra.mxu1 %v2530_v37  ;;  %v1870_v37 = vld [vmem:[%s4228_s28 + $0x8] sm:$0xff] }
 0x3c2   : > { %2439 = vmatmul.mubr.msk.f32.vlgmr.msra.gmra.mrb[2].mxu0 %vm1156_vm4, %v1275_v18  ;;  %2532 = vmatprep.subr.bf16.mxu1 %v3353_v45  ;;  %v2317_v18 = vld [vmem:[#allocation28] ss:$0 sm:$0xff] }
 0x3c3   : > { %2463 = vmatprep.mubr.msk.f32.mxu0 %vm3354_vm3, %v3355_v48  ;;  %2537 = vmatpush3.bf16.msra.mxu0 %v2536_v57 }
 0x3c4   : > { %2538 = vmatprep.subr.bf16.mxu0 %v3353_v45 }
 0x3c7   : > { %2540 = vmatpush3.bf16.msra.mxu0 %v2539_v0 }
 0x3c8   : > { %2550 = vmatprep.subr.bf16.mxu0 %v3353_v45 }
 0x493   : > { %v1351_v19 = vpop.f32.mrb[0].mxu1 }
 0x494   : > { %v2433_v20 = vpop.f32.mrb[1].mxu1  ;;  %v1432_v21 = vsel %vm1431_vm6, %v1351_v19, -inf }
 0x495   : > { %1433 = vmax.xlane.f32.xlu0 %v1432_v21  ;;  %v1427_v22 = vpop.f32.mrb[2].mxu0 }
 0x496   : > { %v2440_v23 = vpop.f32.mrb[3].mxu0  ;;  %v1435_v24 = vsel %vm1431_vm6, %v1427_v22, -inf }
 0x499   : > { %1436 = vmax.xlane.f32.xlu0 %v1435_v24 }
 0x522   : > { %v1434_v25 = vpop.xlane.xlu0 %1433 }
 0x523   : > { %v1438_v26 = vsub.f32 %v1351_v19, %v1434_v25 }
 0x525   : > { %v1440_v27 = vmul.f32 1.442695, %v1438_v26 }
 0x526   : > { %v1437_v28 = vpop.xlane.xlu0 %1436 }
 0x527   : > { %2763 = vpow2.f32 %v1440_v27  ;;  %v1439_v29 = vsub.f32 %v1427_v22, %v1437_v28  ;;  %v3359_v27 = vmov 0  }
 0x528   : > { %2761 = vset.pattern.permute.xlu1 %v3359_v27  ;;  %2762 = vset.pattern.permute.xlu0 %v3359_v27 }
 0x529   : > { %v1442_v30 = vmul.f32 1.442695, %v1439_v29 }
 0x52b   : > { %2765 = vpow2.f32 %v1442_v30 }
 0x531   : > { %v2764_v31 = vpop.eup %2763 }
 0x532   : > { %v1444_v32 = vsel %vm1431_vm6, %v2764_v31, 0.0 }
 0x533   : > { %1445 = vadd.xlane.f32.xlu1 %v1444_v32  ;;  %v1955_v32 = vld [vmem:[%s4227_s30] sm:$0x3] }
 0x535   : > { %v2766_v33 = vpop.eup %2765 }
 0x536   : > { %v1447_v34 = vsel %vm1431_vm6, %v2766_v33, 0.0 }
 0x537   : > { %1448 = vadd.xlane.f32.xlu1 %v1447_v34 }
 0x548   : > { %1849 = vrot.lane.b32.xlu1 %v1144_v4, %s4161_s6 }
 0x5c0   : > { %v1446_v38 = vpop.xlane.xlu1 %1445 }
 0x5c1   : > { %2767 = vrcp.f32 %v1446_v38  ;;  %v1871_v38 = vld [vmem:[%s4228_s28 + $0x10] sm:$0xff] }
 0x5c2   : > { %v2554_v41 = vpack.c.bf16 %v1872_v40, %v1871_v38 }
 0x5c4   : > { %v1449_v39 = vpop.xlane.xlu1 %1448 }
 0x5c5   : > { %2769 = vrcp.f32 %v1449_v39  ;;  %v2551_v39 = vpack.c.bf16 %v1870_v37, %v1869_v36 }
 0x5c8   : > { %v1850_v28 = vpop.permute.xlu1 %1849 }
 0x5cb   : > { %v2768_v42 = vpop.eup %2767 }
 0x5cc   : > { %v1452_v44 = vmul.f32 %v2768_v42, %v2764_v31 }
 0x5ce   : > { %2446 = vmatmul.mubr.msk.f32.vlgmr.msra.gmra.mrb[2].mxu1 %vm1454_vm7, %v1452_v44 }
 0x5cf   : > { %v2770_v49 = vpop.eup %2769  ;;  %2534 = vmatpush3.bf16.msra.mxu1 %v2533_v43  ;;  %2452 = vmatprep.mubr.msk.f32.mxu1 %vm3354_vm3, %v3355_v48 }
 0x5d0   : > { %v1453_v52 = vmul.f32 %v2770_v49, %v2766_v33  ;;  %2541 = vmatprep.subr.bf16.mxu1 %v3353_v45  ;;  %v1956_v33 = vstv %s4226_s3 }
 0x5d1   : > { %vm1957_vm9 = vcmp.gt.s32.totalorder %v1955_v32, %v1956_v33 }
 0x5d2   : > { %2453 = vmatmul.mubr.msk.f32.vlgmr.msra.gmra.mrb[4].mxu1 %vm1454_vm7, %v1453_v52  ;;  %v1982_v53 = vrot.slane %v1453_v52, 7  ;;  %v1958_v35 = vsel %vm1957_vm9, 1, %v3359_v27 }
 0x5d3   : > { %2543 = vmatpush3.bf16.msra.mxu1 %v2542_v51  ;;  %2470 = vmatprep.mubr.msk.f32.mxu1 %vm3354_vm3, %v3355_v48 }
 0x5d4   : > { %2544 = vmatprep.subr.bf16.mxu1 %v3353_v45  ;;  %v3990_v54 = vsel %vm1611_vm8, %v1982_v53, %v1452_v44 }
 0x5d6   : > { %2471 = vmatmul.mubr.msk.f32.vlgmr.msra.gmra.mrb[6].mxu1 %vm1454_vm7, %v1601_v61 }
 0x5d7   : > { %2546 = vmatpush3.bf16.msra.mxu1 %v2545_v60  ;;  %2481 = vmatprep.mubr.msk.f32.mxu1 %vm3354_vm3, %v3355_v48 }
 0x5d8   : > { %2547 = vmatprep.subr.bf16.mxu1 %v3353_v45 }
 0x5db   : > { %2549 = vmatpush3.bf16.msra.mxu1 %v2548_v3 }
 0x5de   : > { %2482 = vmatmul.mubr.msk.f32.vlgmr.msra.gmra.mrb[8].mxu1 %vm1156_vm4, %v3959_v50 }
 0x6a1   : > { %v1524_v5 = vpop.f32.mrb[2].mxu1 }
 0x6a2   : > { %v2447_v6 = vpop.f32.mrb[3].mxu1 }
 0x6a5   : > { %v1597_v7 = vpop.f32.mrb[4].mxu1 }
 0x6a6   : > { %v1610_v8 = vrot.slane %v1597_v7, 7  ;;  %v2454_v9 = vpop.f32.mrb[5].mxu1 }
 0x6a8   : > { %v1612_v10 = vsel %vm1611_vm8, %v1610_v8, %v1524_v5 }
 0x6a9   : > { %2464 = vmatmul.mubr.msk.f32.vlgmr.msra.gmra.mrb[4].mxu0 %vm1156_vm4, %v1612_v10  ;;  %v1754_v11 = vpop.f32.mrb[6].mxu1 }
 0x6aa   : > { %2492 = vmatprep.mubr.msk.f32.mxu0 %vm3354_vm3, %v3355_v48  ;;  %v2472_v12 = vpop.f32.mrb[7].mxu1  ;;  %2552 = vmatpush3.bf16.msra.mxu0 %v2551_v39 }
 0x6ab   : > { %2553 = vmatprep.subr.bf16.mxu0 %v3353_v45 }
 0x6ae   : > { %2555 = vmatpush3.bf16.msra.mxu0 %v2554_v41 }
 0x6b1   : > { %v1828_v13 = vpop.f32.mrb[8].mxu1 }
 0x6b2   : > { %v2483_v14 = vpop.f32.mrb[9].mxu1 }
 0x77c   : > { %v1681_v15 = vpop.f32.mrb[4].mxu0 }
 0x77d   : > { %v1755_v16 = vadd.f32 %v1754_v11, %v1681_v15  ;;  %v2465_v17 = vpop.f32.mrb[5].mxu0 }
 0x77f   : > { %v1832_v19 = vadd.f32 %v1828_v13, %v1755_v16 }
 0x781   : > { %v1840_v20 = vadd.f32 %v2317_v18, %v1832_v19 }
 0x783   : > { %2771 = vtanh.f32 %v1840_v20  ;;  %v2318_v22 = vmul.f32 -1.442695, %v1840_v20 }
 0x785   : > { %2773 = vpow2.f32 %v2318_v22 }
 0x78d   : > { %v2772_v21 = vpop.eup %2771 }
 0x78e   : > { %1854 = vrot.lane.b32.xlu0 %v2772_v21, %s3358_s17 }
 0x78f   : > { %v2774_v23 = vpop.eup %2773 }
 0x790   : > { %v1844_v24 = vadd.f32 1.0, %v2774_v23 }
 0x792   : > { %2775 = vrcp.f32 %v1844_v24 }
 0x79c   : > { %v2776_v48 = vpop.eup %2775 }
 0x79d   : > { %v1852_v29 = vmul.f32 %v2776_v48, %v1850_v28 }
 0x800   : > { %v1855_v25 = vpop.permute.xlu0 %1854 }
 0x801   : > { %v1857_v26 = vmul.f32 %v2776_v48, %v1855_v25 }
 0x803   : > { %1859 = vrot.lane.b32.xlu1 %v1857_v26, %s4161_s6 }
 0x875   : > { %v1860_v30 = vpop.permute.xlu1 %1859 }
 0x876   : > { %v1862_v31 = vadd.f32 %v1860_v30, %v1852_v29 }
 0x878   : > { %2777 = vtanh.f32 %v1862_v31 }
 0x882   : > { %v2778_v34 = vpop.eup %2777 }
 0x883   : > { %1865 = vrot.lane.b32.xlu1 %v2778_v34, %s3358_s17  ;;  %s4229_s17 = smov 32  }
 0x887   : > { %1960 = vperm.xlu1 %2761, %v1958_v35  }
 0x8f5   : > { %v1866_v42 = vpop.permute.xlu1 %1865 }
 0x8f6   : > { %v1868_v43 = vmul.f32 %v2776_v48, %v1866_v42 }
 0x8f8   : > { %1881 = vrot.lane.b32.xlu0 %v1868_v43, %s4229_s17 }
 0x8fc   : > { %1963 = vrot.lane.b32.xlu0 %v3959_v50, %s3360_s21 }
 0x906   : > { %v1961_v44 = vpop.permute.xlu1 %1960 }
 0x907   : > { %vm1962_vm11 = vcmp.eq.s32.totalorder %v1961_v44, 1 }
 0x908   : > { %v1973_v46 = vsel %vm1962_vm11, %v1862_v31, %v1850_v28  ;;  %v1985_v45 = vsel %vm1962_vm11, %v3990_v54, 0.0 }
 0x909   : > { %1975 = vrot.lane.b32.xlu0 %v1973_v46, %s3360_s21  ;;  %1987 = vst.msk [vmem:[%s4230_s5] sm:$0x3] %vm1986_vm10, %v1985_v45  ;;  %s1994_s21 = scalar_lea.sflag [#allocation31], %s3884_s25  ;;  %s3201_s5 = scalar_lea.vmem %s2021_s1, 32 }
 0x90a   : > { %p3202_p0 = scmp.ne.s32.totalorder %s2021_s1, %s3201_s5 }
 0x90c   : > { %p3203_p11 = pnand %p3202_p0, %p4233_p2 }
 0x90e   : > { %p3204_p12 = pneg %p3203_p11 }
 0x96a   : > { %v1882_v47 = vpop.permute.xlu0 %1881 }
 0x96b   : > { %2493 = vmatmul.mubr.msk.f32.vlgmr.msra.gmra.mrb[6].mxu0 %vm1156_vm4, %v1882_v47 }
 0x96e   : > { %v1964_v50 = vpop.permute.xlu0 %1963 }
 0x96f   : > { %v1966_v49 = vsel %vm1962_vm11, %v1868_v43, %v1964_v50 }
 0x970   : > { %1968 = vrot.lane.b32.xlu1 %v1966_v49, %s4229_s17  ;;  %s3361_s17 = smov [#allocation30]  }
 0x971   : > { %s3205_s8 = sshll.u32 %s3361_s17, 4  ;;  %s3206_s8 = int_to_ptr.vmem [resolvable:$false] %s3205_s8 }
 0x972   : > { %s3207_s9 = scalar_lea.vmem %s3206_s8, 64  ;;  %p3208_p5 = scmp.lt.s32.totalorder %s2021_s1, %s3206_s8 }
 0x973   : > { %p3209_p6 = scmp.lt.s32.totalorder %s3207_s9, %s3201_s5 }
 0x975   : > { %p3210_p7 = por %p3209_p6, %p3208_p5 }
 0x977   : > { %p3211_p3 = pnand %p3210_p7, %p3204_p12 }
 0x97b   : > { %v1976_v51 = vpop.permute.xlu0 %1975 }
 0x97c   : > { %1978 = vst.msk [vmem:[#allocation3] sm:$0x3] %vm1971_vm12, %v1976_v51 }
 0x97d   : > { %3214 = shalt.err (!%p3211_p3)
}
 0x97e   : > { %s3215_s6 = scalar_lea.hbm %s4042_s18, 32  ;;  %s3219_s17 = scalar_lea.hbm %s4231_s19, 192 }
 0x97f   : > { %p3216_p1 = scmp.ne.s32.totalorder %s4042_s18, %s3215_s6  ;;  %p3220_p8 = scmp.lt.u32.totalorder %s4042_s18, %s4231_s19 }
 0x980   : > { %p3221_p10 = scmp.lt.u32.totalorder %s3219_s17, %s3215_s6  ;;  %p3223_p0 = scmp.lt.u32.totalorder %s3215_s6, %s4042_s18 }
 0x981   : > { %p3217_p4 = pnand %p3216_p1, %p4233_p2 }
 0x982   : > { %p3222_p13 = por %p3221_p10, %p3220_p8 }
 0x983   : > { %p3218_p9 = pneg %p3217_p4 }
 0x984   : > { %p3224_p11 = por %p3223_p0, %p3222_p13 }
 0x986   : > { %p3225_p12 = pnand %p3224_p11, %p3218_p9 }
 0x988   : > { %3228 = shalt.err (!%p3225_p12)
}
 0x989   : > { %2615 = dma.vmem_to_hbm [thread:$0]  (%p4233_p2), %s2021_s1, 32, %s4042_s18, %s1994_s21   ;;  %vm1980_vm13 = vcmask 402432  }
 0x98a   : > { %s4234_s5 = sld [smem:[#allocation59_spill]]  ;;  %s4235_s6 = scalar_lea.vmem [#allocation29], %s3887_s20 }
 0x98b   : > { %s2007_s30 = sshll.u32 %s4235_s6, 4  ;;  %s4236_s2 = sshll.u32 %s4226_s3, 5  ;;  %s4077_s30 = int_to_ptr.vmem [resolvable:$true] %s2007_s30 }
 0x98c   : > { %s4237_s10 = sld [smem:[#allocation60_spill]]  ;;  %s4238_s18 = smov %s4235_s6 }
 0x98d   : > { %s1989_s1 = scalar_lea.sflag [#allocation7], %s3884_s25  ;;  %s3229_s21 = scalar_lea.vmem %s4077_s30, 32 }
 0x98e   : > { %p3230_p5 = scmp.ne.s32.totalorder %s4077_s30, %s3229_s21  ;;  %s3362_s3 = smov [#allocation29]  }
 0x98f   : > { %s3233_s9 = sshll.u32 %s3362_s3, 4  ;;  %s3234_s9 = int_to_ptr.vmem [resolvable:$false] %s3233_s9 }
 0x990   : > { %v2319_v53 = vld [vmem:[%s4234_s5] ss:$0 sm:$0xff]  ;;  %p3231_p6 = pnand %p3230_p5, %p4233_p2  ;;  %s3235_s7 = scalar_lea.vmem %s3234_s9, 64 }
 0x991   : > { %p3236_p3 = scmp.lt.s32.totalorder %s4077_s30, %s3234_s9  ;;  %p3237_p1 = scmp.lt.s32.totalorder %s3235_s7, %s3229_s21 }
 0x992   : > { %s4075_s11 = scalar_lea.hbm %s4237_s10, %s4236_s2  ;;  %p3232_p7 = pneg %p3231_p6 }
 0x993   : > { %p3238_p4 = por %p3237_p1, %p3236_p3 }
 0x995   : > { %p3239_p9 = pnand %p3238_p4, %p3232_p7 }
 0x9e2   : > { %v1969_v52 = vpop.permute.xlu1 %1968 }
 0x9e3   : > { %1972 = vst.msk [vmem:[#allocation2] sm:$0x3] %vm1971_vm12, %v1969_v52 }
 0xa3e   : > { %v1951_v54 = vpop.f32.mrb[6].mxu0 }
 0xa3f   : > { %v1952_v55 = vadd.f32 %v2319_v53, %v1951_v54  ;;  %v2494_v56 = vpop.f32.mrb[7].mxu0 }
 0xa41   : > { %v1979_v57 = vsel %vm1962_vm11, %v1952_v55, 0.0 }
 0xa42   : > { %1981 = vst.msk [vmem:[%s4238_s18] sm:$0x3] %vm1980_vm13, %v1979_v57 }
 0xa43   : > { %3242 = shalt.err (!%p3239_p9)
}
 0xa44   : > { %s3243_s25 = scalar_lea.hbm %s4075_s11, 32  ;;  %s3247_s6 = scalar_lea.hbm %s4237_s10, 192 }
 0xa45   : > { %p3244_p8 = scmp.ne.s32.totalorder %s4075_s11, %s3243_s25  ;;  %p3248_p0 = scmp.lt.u32.totalorder %s4075_s11, %s4237_s10 }
 0xa46   : > { %p3249_p11 = scmp.lt.u32.totalorder %s3247_s6, %s3243_s25  ;;  %p3251_p5 = scmp.lt.u32.totalorder %s3243_s25, %s4075_s11 }
 0xa47   : > { %p3245_p10 = pnand %p3244_p8, %p4233_p2 }
 0xa48   : > { %p3250_p12 = por %p3249_p11, %p3248_p0 }
 0xa49   : > { %p3246_p13 = pneg %p3245_p10 }
 0xa4a   : > { %p3252_p6 = por %p3251_p5, %p3250_p12 }
 0xa4c   : > { %p3253_p7 = pnand %p3252_p6, %p3246_p13 }
 0xa4e   : > { %3256 = shalt.err (!%p3253_p7)
}
 0xa4f   : > { %2614 = dma.vmem_to_hbm [thread:$0]  (%p4233_p2), %s4077_s30, 32, %s4075_s11, %s1989_s1  }
 0xa50 PF: > { %s4239_s8 = sld [smem:[#allocation43_spill]]  ;;  %p2701_p3 = scmp.ge.s32.totalorder %s3331_s24, 2 }
 0xa51   : > { %p4240_p1 = scmp.ne.s32.totalorder %s4202_s0, 0 }
 0xa53   : > { %p2666_p4 = pnand %p2701_p3, %p4240_p1 }
 0xa56   : > { %s2032_s18 = sand.u32 1, %s4239_s8  }
 0xa57   : > { %s2033_s21 = scalar_lea.sflag [#allocation7], %s2032_s18 }
 0xa58   : > { %3310 = dma.done.wait (!%p2666_p4), %s2033_s21, 32  }
 0xa59   : > { %3312 = vsyncadd (!%p2666_p4), %s2033_s21, 4294967264  ;;  %s2042_s3 = scalar_lea.sflag [#allocation31], %s2032_s18 }
 0xa5a   : > { %3314 = dma.done.wait (!%p2666_p4), %s2042_s3, 32  }
 0xa5b   : > { %3316 = vsyncadd (!%p2666_p4), %s2042_s3, 4294967264  ;;  %p44_p2 = scmp.ge.s32.totalorder %s3802_s4, 8   ;;  %s4241_s1 = smov %s3323_s22 }
 0xa5c   : > { %s4242_s22 = smov %s3327_s23  ;;  %s4243_s23 = smov %s3813_s26 }
 0xa5d   : > { %s4244_s24 = smov %s3802_s4  ;;  %46 = sbr.rel (!%p44_p2) target bundleno = 31 (0x1f), region = 219 }
 0xa64   :  { %2047 = vsyncpa [#allocation6], 1 }
 0xa65   :  { %2049 = vsyncpa [#allocation6 + $0x1], 1 }
 0xa66   :  { %2050 = vsyncpa [#allocation9], 1 }
 0xa67   :  { %2052 = vsyncpa [#allocation9 + $0x1], 1 }
 0xa68   :  { %2053 = vsyncpa [#allocation12], 1 }
 0xa69   :  { %2054 = vsyncpa [#allocation15], 1 }
 0xa6a   :  { %2055 = vsyncpa [#allocation18], 1 }
 0xa6b   :  { %2056 = vsyncpa [#allocation21], 1 }
 0xa6c   :  { %2057 = vsyncpa [#allocation24], 1 }
 0xa6d   :  { %2058 = vsyncpa [#allocation27], 1 }
 0xa6e   :  { %2059 = vsyncpa [#allocation7], 1 }
 0xa6f   :  { %2061 = vsyncpa [#allocation7 + $0x1], 1 }
 0xa70   :  { %2062 = vsyncpa [#allocation31], 1 }
 0xa71   :  { %2064 = vsyncpa [#allocation31 + $0x1], 1 }

</bundles_post_ra>
